<compile_context>
chip_gen: v7x
topology: tpu7x:2x2x1
jax: 0.10.0
libtpu: 0.0.40
codegen_flags: <defaults>
</compile_context>

<pallas_src>
import jax
import jax.numpy as jnp
from jax.experimental import pallas as pl
from jax.experimental.pallas import tpu as pltpu


def _round_up(x, m):
    return ((x + m - 1) // m) * m


def _choose_bm(M, block_m):
    """Row-block size: multiple of 8, capped at block_m, and (when there are
    enough rows) at least 2 grid blocks so both v7x TensorCores get work."""
    Mr = _round_up(max(M, 1), 8)
    bm = min(block_m, Mr)
    if Mr > 8 and Mr // bm < 2:
        bm = _round_up((Mr + 1) // 2, 8)
    Mpad = _round_up(M, bm)
    return bm, Mpad


# ----------------------------- Pallas kernels ------------------------------

def _conv_pool_kernel(p_ref, w_ref, b_ref, o_ref):
    """Fused conv (im2col matmul) + 2x2 max-pool + bias + ReLU.

    p_ref: (4, bm, K) bf16 -- the four pool-quadrant patch matrices, stacked.
    w_ref: (K, 128) bf16 weights (output channels zero-padded to 128 lanes).
    b_ref: (1, 128) f32 bias (zero-padded).
    o_ref: (bm, 128) bf16 pooled activations (lane-dense store; valid channels
           are sliced out in the XLA wrapper).
    """
    nq, bm, K = p_ref.shape
    # One long (4*bm, K) x (K, 128) matmul: quadrants stacked along M keep the
    # MXU streaming instead of four short fill/drain sequences.
    p = p_ref[...].reshape(nq * bm, K)           # leading-dim collapse: free (bm % 8 == 0)
    acc = jnp.dot(p, w_ref[...], preferred_element_type=jnp.float32)   # (4*bm, 128) f32
    # Max over the four quadrants first (sublane-aligned row groups), then a single
    # bias add + ReLU -- identical to relu(acc+b) per quadrant followed by max.
    m = jnp.maximum(jnp.maximum(acc[0 * bm:1 * bm], acc[1 * bm:2 * bm]),
                    jnp.maximum(acc[2 * bm:3 * bm], acc[3 * bm:4 * bm]))
    o_ref[...] = jnp.maximum(m + b_ref[...], 0.0).astype(o_ref.dtype)


def _fc_fused_kernel(x_ref, w1_ref, b1_ref, w2_ref, b2_ref, w3_ref, b3_ref, o_ref):
    """fc1+ReLU -> fc2+ReLU -> fc3, all intermediates kept in VMEM (128 lanes)."""
    h = jnp.dot(x_ref[...], w1_ref[...], preferred_element_type=jnp.float32)
    h = jnp.maximum(h + b1_ref[...], 0.0).astype(jnp.bfloat16)
    h = jnp.dot(h, w2_ref[...], preferred_element_type=jnp.float32)
    h = jnp.maximum(h + b2_ref[...], 0.0).astype(jnp.bfloat16)
    h = jnp.dot(h, w3_ref[...], preferred_element_type=jnp.float32)
    o_ref[...] = (h + b3_ref[...]).astype(o_ref.dtype)


# ------------------------------ JAX glue ------------------------------------

def _im2col_quadrants(x, kh, kw):
    """x: (N, H, W, C) -> (4, N*Hp*Wp, kh*kw*C) stacked quadrant patch matrices.
    Row (n, hp, wp) of quadrant (a, b) is the patch at conv output position
    (2*hp + a, 2*wp + b); column order is (i, j, c)."""
    N, H, W, C = x.shape
    Ho, Wo = H - kh + 1, W - kw + 1
    Hp, Wp = Ho // 2, Wo // 2
    quads = []
    for a in (0, 1):
        for b in (0, 1):
            cols = []
            for i in range(kh):
                for j in range(kw):
                    cols.append(x[:, a + i: a + i + 2 * Hp: 2,
                                  b + j: b + j + 2 * Wp: 2, :])
            q = jnp.concatenate(cols, axis=-1)          # (N, Hp, Wp, kh*kw*C)
            quads.append(q.reshape(N * Hp * Wp, kh * kw * C))
    return jnp.stack(quads, axis=0), (N, Hp, Wp)


# ----------------------------- Pallas wrappers -------------------------------

def conv_relu_pool(x_nhwc, w_mat, b_vec, *, cout, kh=5, kw=5, block_m=1024):
    """Fused valid conv (stride 1) + 2x2/2 max-pool + bias + ReLU.

    x_nhwc: (N, H, W, Cin); w_mat: (kh*kw*Cin, 128) bf16; b_vec: (1, 128) f32.
    Returns (N, Hp, Wp, cout) bf16.
    """
    x = x_nhwc.astype(jnp.bfloat16)
    quads, (N, Hp, Wp) = _im2col_quadrants(x, kh, kw)
    M = N * Hp * Wp
    K = quads.shape[-1]
    bm, Mpad = _choose_bm(M, block_m)
    quads = jnp.pad(quads, ((0, 0), (0, Mpad - M), (0, 0)))

    out = pl.pallas_call(
        _conv_pool_kernel,
        out_shape=jax.ShapeDtypeStruct((Mpad, 128), jnp.bfloat16),
        grid=(Mpad // bm,),
        in_specs=[pl.BlockSpec((4, bm, K), lambda i: (0, i, 0)),
                  pl.BlockSpec((K, 128), lambda i: (0, 0)),
                  pl.BlockSpec((1, 128), lambda i: (0, 0))],
        out_specs=pl.BlockSpec((bm, 128), lambda i: (i, 0)),
        compiler_params=pltpu.CompilerParams(
            dimension_semantics=("parallel",)),
    )(quads, w_mat, b_vec)
    # Lane-dense 128-wide bf16 store in-kernel; slice valid channels in XLA.
    return out[:M, :cout].reshape(N, Hp, Wp, cout)


def fc_fused(flat, F1, FB1, F2, FB2, F3, FB3, *, block_m=1024):
    """flat: (M, 400).  Returns (Mpad, 128) f32; first 10 lanes are the logits."""
    M, K = flat.shape
    Kpad = F1.shape[0]                                   # 512 (fc1 contraction padded)
    bm, Mpad = _choose_bm(M, block_m)
    xq = jnp.pad(flat.astype(jnp.bfloat16), ((0, Mpad - M), (0, Kpad - K)))

    return pl.pallas_call(
        _fc_fused_kernel,
        out_shape=jax.ShapeDtypeStruct((Mpad, 128), jnp.float32),
        grid=(Mpad // bm,),
        in_specs=[
            pl.BlockSpec((bm, Kpad), lambda i: (i, 0)),
            pl.BlockSpec((Kpad, 128), lambda i: (0, 0)),
            pl.BlockSpec((1, 128), lambda i: (0, 0)),
            pl.BlockSpec((128, 128), lambda i: (0, 0)),
            pl.BlockSpec((1, 128), lambda i: (0, 0)),
            pl.BlockSpec((128, 128), lambda i: (0, 0)),
            pl.BlockSpec((1, 128), lambda i: (0, 0)),
        ],
        out_specs=pl.BlockSpec((bm, 128), lambda i: (i, 0)),
        compiler_params=pltpu.CompilerParams(
            dimension_semantics=("parallel",)),
    )(xq, F1, FB1, F2, FB2, F3, FB3)


# --------------------------- parameter preparation ---------------------------

def prepare_params(params):
    """One-time (outside the hot path) reshaping, padding and bf16 casting of
    the PyTorch-layout parameters."""
    (w1, b1, w2, b2, fw1, fb1, fw2, fb2, fw3, fb3) = params

    def conv_w(w):
        # (Cout, Cin, KH, KW) -> (KH*KW*Cin, 128) bf16, output channels zero-padded
        Cout, Cin, KH, KW = w.shape
        m = jnp.transpose(w, (2, 3, 1, 0)).reshape(KH * KW * Cin, Cout)
        return jnp.pad(m, ((0, 0), (0, 128 - Cout))).astype(jnp.bfloat16)

    def pad_bias(b):
        return jnp.pad(b, (0, 128 - b.shape[0])).reshape(1, 128).astype(jnp.float32)

    W1, B1 = conv_w(w1), pad_bias(b1)
    W2, B2 = conv_w(w2), pad_bias(b2)

    # fc1: permute input-feature columns from PyTorch NCHW flatten order
    # (c*25 + h*5 + w) to our NHWC flatten order (h*80 + w*16 + c), then pad the
    # contraction dim 400 -> 512 and the output dim 120 -> 128.
    F1 = jnp.transpose(fw1.reshape(120, 16, 5, 5), (2, 3, 1, 0)).reshape(400, 120)
    F1 = jnp.pad(F1, ((0, 512 - 400), (0, 128 - 120))).astype(jnp.bfloat16)
    FB1 = pad_bias(fb1)
    F2 = jnp.pad(fw2.T, ((0, 128 - 120), (0, 128 - 84))).astype(jnp.bfloat16)
    FB2 = pad_bias(fb2)
    F3 = jnp.pad(fw3.T, ((0, 128 - 84), (0, 128 - 10))).astype(jnp.bfloat16)
    FB3 = pad_bias(fb3)
    return (W1, B1, W2, B2, F1, FB1, F2, FB2, F3, FB3)


# ------------------------------- forward pass --------------------------------

def net_forward(x_nchw, prep):
    (W1, B1, W2, B2, F1, FB1, F2, FB2, F3, FB3) = prep
    N = x_nchw.shape[0]
    x = jnp.transpose(x_nchw, (0, 2, 3, 1))               # NCHW -> NHWC

    y = conv_relu_pool(x, W1, B1, cout=6)                  # (N, 14, 14, 6) bf16
    y = conv_relu_pool(y, W2, B2, cout=16)                 # (N, 5, 5, 16) bf16

    flat = y.reshape(N, 400)                               # NHWC flatten (F1 pre-permuted)
    out = fc_fused(flat, F1, FB1, F2, FB2, F3, FB3)        # (Mpad, 128) f32
    return out[:N, :10]


# --------------------------- pure-JAX reference ------------------------------

def reference_forward(x, params):
    (w1, b1, w2, b2, fw1, fb1, fw2, fb2, fw3, fb3) = params

    def conv(x, w, b):
        y = jax.lax.conv_general_dilated(
            x, w, window_strides=(1, 1), padding='VALID',
            dimension_numbers=('NCHW', 'OIHW', 'NCHW'))
        return y + b[None, :, None, None]

    def pool(y):
        return jax.lax.reduce_window(y, -jnp.inf, jax.lax.max,
                                     (1, 1, 2, 2), (1, 1, 2, 2), 'VALID')

    y = pool(jnp.maximum(conv(x, w1, b1), 0.0))
    y = pool(jnp.maximum(conv(y, w2, b2), 0.0))
    y = y.reshape(x.shape[0], -1)
    y = jnp.maximum(y @ fw1.T + fb1, 0.0)
    y = jnp.maximum(y @ fw2.T + fb2, 0.0)
    return y @ fw3.T + fb3


# ---------------------------------- main -------------------------------------

def init_params(key):
    def u(key, shape, fan_in):
        bound = 1.0 / jnp.sqrt(fan_in)
        return jax.random.uniform(key, shape, jnp.float32, -bound, bound)

    ks = jax.random.split(key, 10)
    w1 = u(ks[0], (6, 3, 5, 5), 3 * 5 * 5)
    b1 = u(ks[1], (6,), 3 * 5 * 5)
    w2 = u(ks[2], (16, 6, 5, 5), 6 * 5 * 5)
    b2 = u(ks[3], (16,), 6 * 5 * 5)
    fw1 = u(ks[4], (120, 400), 400)
    fb1 = u(ks[5], (120,), 400)
    fw2 = u(ks[6], (84, 120), 120)
    fb2 = u(ks[7], (84,), 120)
    fw3 = u(ks[8], (10, 84), 84)
    fb3 = u(ks[9], (10,), 84)
    return (w1, b1, w2, b2, fw1, fb1, fw2, fb2, fw3, fb3)


if __name__ == "__main__":
    key = jax.random.PRNGKey(0)
    kx, kp = jax.random.split(key)
    # Input must be 32x32 so that the flatten is 16*5*5 = 400 (as in the module).
    x = jax.random.normal(kx, (2, 3, 32, 32), dtype=jnp.float32)
    params = init_params(kp)
    prep = prepare_params(params)          # one-time weight prep, outside the hot path

    out = jax.jit(net_forward)(x, prep)
    out = jax.block_until_ready(out)

    ref = reference_forward(x, params)     # f32 reference
    assert out.shape == (2, 10), out.shape
    # bf16 MXU inputs with f32 accumulation: allow a few % numerical slack vs f32.
    assert jnp.allclose(out, ref, rtol=5e-2, atol=5e-2), (
        f"max abs diff {jnp.max(jnp.abs(out - ref))}")
    print("KERNEL_OK")
</pallas_src>

<mosaic_0001>
module attributes {stable_mosaic.version = 11 : i64} {
  func.func @_conv_pool_kernel(%arg0: i32, %arg1: memref<4x200x75xbf16, #tpu.memory_space<vmem>>, %arg2: memref<75x128xbf16, #tpu.memory_space<vmem>>, %arg3: memref<1x128xf32, #tpu.memory_space<vmem>>, %arg4: memref<200x128xbf16, #tpu.memory_space<vmem>>) attributes {dimension_semantics = [#tpu.dimension_semantics<parallel>], iteration_bounds = array<i64: 2>, scalar_prefetch = 0 : i64, scratch_operands = 0 : i64, tpu.core_type = #tpu.core_type<tc>, window_params = [{transform_indices = @transform_0, window_bounds = array<i64: 4, 200, 75>}, {pipeline_mode = #tpu.pipeline_mode<synchronous>, transform_indices = @transform_1, window_bounds = array<i64: 75, 128>}, {pipeline_mode = #tpu.pipeline_mode<synchronous>, transform_indices = @transform_2, window_bounds = array<i64: 1, 128>}, {transform_indices = @transform_3, window_bounds = array<i64: 200, 128>}]} {
    %c0 = arith.constant 0 : index
    %c0_0 = arith.constant 0 : index
    %c0_1 = arith.constant 0 : index
    %0 = vector.load %arg1[%c0, %c0_0, %c0_1] : memref<4x200x75xbf16, #tpu.memory_space<vmem>>, vector<4x200x75xbf16>
    %1 = vector.shape_cast %0 : vector<4x200x75xbf16> to vector<800x75xbf16>
    %c0_2 = arith.constant 0 : index
    %c0_3 = arith.constant 0 : index
    %2 = vector.load %arg2[%c0_2, %c0_3] : memref<75x128xbf16, #tpu.memory_space<vmem>>, vector<75x128xbf16>
    %cst = arith.constant dense<0.000000e+00> : vector<800x128xf32>
    %3 = tpu.matmul %1, %2, %cst {dimension_numbers = #tpu.dot_dimension_numbers<[1], [0], [0], [1], [0, 0, 1, 1], [], []>} : vector<800x75xbf16>, vector<75x128xbf16>, vector<800x128xf32> -> vector<800x128xf32>
    %4 = vector.extract_strided_slice %3 {offsets = [0, 0], sizes = [200, 128], strides = [1, 1]} : vector<800x128xf32> to vector<200x128xf32>
    %5 = vector.extract_strided_slice %3 {offsets = [200, 0], sizes = [200, 128], strides = [1, 1]} : vector<800x128xf32> to vector<200x128xf32>
    %6 = arith.maximumf %4, %5 : vector<200x128xf32>
    %7 = vector.extract_strided_slice %3 {offsets = [400, 0], sizes = [200, 128], strides = [1, 1]} : vector<800x128xf32> to vector<200x128xf32>
    %8 = vector.extract_strided_slice %3 {offsets = [600, 0], sizes = [200, 128], strides = [1, 1]} : vector<800x128xf32> to vector<200x128xf32>
    %9 = arith.maximumf %7, %8 : vector<200x128xf32>
    %10 = arith.maximumf %6, %9 : vector<200x128xf32>
    %c0_4 = arith.constant 0 : index
    %c0_5 = arith.constant 0 : index
    %11 = vector.load %arg3[%c0_4, %c0_5] : memref<1x128xf32, #tpu.memory_space<vmem>>, vector<1x128xf32>
    %12 = vector.broadcast %11 : vector<1x128xf32> to vector<200x128xf32>
    %13 = arith.addf %10, %12 : vector<200x128xf32>
    %cst_6 = arith.constant 0.000000e+00 : f32
    %14 = vector.broadcast %cst_6 : f32 to vector<200x128xf32>
    %15 = arith.maximumf %13, %14 : vector<200x128xf32>
    %16 = arith.truncf %15 : vector<200x128xf32> to vector<200x128xbf16>
    %c0_7 = arith.constant 0 : index
    %c0_8 = arith.constant 0 : index
    %17 = vector.load %arg4[%c0_7, %c0_8] : memref<200x128xbf16, #tpu.memory_space<vmem>>, vector<200x128xbf16>
    tpu.vector_store %arg4[%c0_7, %c0_8], %16 {strides = array<i32>} : memref<200x128xbf16, #tpu.memory_space<vmem>>, vector<200x128xbf16>,
    return
  }
  func.func @transform_0(%arg0: i32) -> (i32, i32, i32) {
    %c0_i32 = arith.constant 0 : i32
    %c0_i32_0 = arith.constant 0 : i32
    %c0_i32_1 = arith.constant 0 : i32
    return %c0_i32, %arg0, %c0_i32_0 : i32, i32, i32
  }
  func.func @transform_1(%arg0: i32) -> (i32, i32) {
    %c0_i32 = arith.constant 0 : i32
    %c0_i32_0 = arith.constant 0 : i32
    %c0_i32_1 = arith.constant 0 : i32
    return %c0_i32, %c0_i32_0 : i32, i32
  }
  func.func @transform_2(%arg0: i32) -> (i32, i32) {
    %c0_i32 = arith.constant 0 : i32
    %c0_i32_0 = arith.constant 0 : i32
    %c0_i32_1 = arith.constant 0 : i32
    return %c0_i32, %c0_i32_0 : i32, i32
  }
  func.func @transform_3(%arg0: i32) -> (i32, i32) {
    %c0_i32 = arith.constant 0 : i32
    %c0_i32_0 = arith.constant 0 : i32
    return %arg0, %c0_i32 : i32, i32
  }
}

module attributes {stable_mosaic.version = 11 : i64} {
  func.func @_conv_pool_kernel(%arg0: i32, %arg1: memref<4x32x150xbf16, #tpu.memory_space<vmem>>, %arg2: memref<150x128xbf16, #tpu.memory_space<vmem>>, %arg3: memref<1x128xf32, #tpu.memory_space<vmem>>, %arg4: memref<32x128xbf16, #tpu.memory_space<vmem>>) attributes {dimension_semantics = [#tpu.dimension_semantics<parallel>], iteration_bounds = array<i64: 2>, scalar_prefetch = 0 : i64, scratch_operands = 0 : i64, tpu.core_type = #tpu.core_type<tc>, window_params = [{transform_indices = @transform_0, window_bounds = array<i64: 4, 32, 150>}, {pipeline_mode = #tpu.pipeline_mode<synchronous>, transform_indices = @transform_1, window_bounds = array<i64: 150, 128>}, {pipeline_mode = #tpu.pipeline_mode<synchronous>, transform_indices = @transform_2, window_bounds = array<i64: 1, 128>}, {transform_indices = @transform_3, window_bounds = array<i64: 32, 128>}]} {
    %c0 = arith.constant 0 : index
    %c0_0 = arith.constant 0 : index
    %c0_1 = arith.constant 0 : index
    %0 = vector.load %arg1[%c0, %c0_0, %c0_1] : memref<4x32x150xbf16, #tpu.memory_space<vmem>>, vector<4x32x150xbf16>
    %1 = vector.shape_cast %0 : vector<4x32x150xbf16> to vector<128x150xbf16>
    %c0_2 = arith.constant 0 : index
    %c0_3 = arith.constant 0 : index
    %2 = vector.load %arg2[%c0_2, %c0_3] : memref<150x128xbf16, #tpu.memory_space<vmem>>, vector<150x128xbf16>
    %cst = arith.constant dense<0.000000e+00> : vector<128x128xf32>
    %3 = tpu.matmul %1, %2, %cst {dimension_numbers = #tpu.dot_dimension_numbers<[1], [0], [0], [1], [0, 0, 1, 1], [], []>} : vector<128x150xbf16>, vector<150x128xbf16>, vector<128x128xf32> -> vector<128x128xf32>
    %4 = vector.extract_strided_slice %3 {offsets = [0, 0], sizes = [32, 128], strides = [1, 1]} : vector<128x128xf32> to vector<32x128xf32>
    %5 = vector.extract_strided_slice %3 {offsets = [32, 0], sizes = [32, 128], strides = [1, 1]} : vector<128x128xf32> to vector<32x128xf32>
    %6 = arith.maximumf %4, %5 : vector<32x128xf32>
    %7 = vector.extract_strided_slice %3 {offsets = [64, 0], sizes = [32, 128], strides = [1, 1]} : vector<128x128xf32> to vector<32x128xf32>
    %8 = vector.extract_strided_slice %3 {offsets = [96, 0], sizes = [32, 128], strides = [1, 1]} : vector<128x128xf32> to vector<32x128xf32>
    %9 = arith.maximumf %7, %8 : vector<32x128xf32>
    %10 = arith.maximumf %6, %9 : vector<32x128xf32>
    %c0_4 = arith.constant 0 : index
    %c0_5 = arith.constant 0 : index
    %11 = vector.load %arg3[%c0_4, %c0_5] : memref<1x128xf32, #tpu.memory_space<vmem>>, vector<1x128xf32>
    %12 = vector.broadcast %11 : vector<1x128xf32> to vector<32x128xf32>
    %13 = arith.addf %10, %12 : vector<32x128xf32>
    %cst_6 = arith.constant 0.000000e+00 : f32
    %14 = vector.broadcast %cst_6 : f32 to vector<32x128xf32>
    %15 = arith.maximumf %13, %14 : vector<32x128xf32>
    %16 = arith.truncf %15 : vector<32x128xf32> to vector<32x128xbf16>
    %c0_7 = arith.constant 0 : index
    %c0_8 = arith.constant 0 : index
    %17 = vector.load %arg4[%c0_7, %c0_8] : memref<32x128xbf16, #tpu.memory_space<vmem>>, vector<32x128xbf16>
    tpu.vector_store %arg4[%c0_7, %c0_8], %16 {strides = array<i32>} : memref<32x128xbf16, #tpu.memory_space<vmem>>, vector<32x128xbf16>,
    return
  }
  func.func @transform_0(%arg0: i32) -> (i32, i32, i32) {
    %c0_i32 = arith.constant 0 : i32
    %c0_i32_0 = arith.constant 0 : i32
    %c0_i32_1 = arith.constant 0 : i32
    return %c0_i32, %arg0, %c0_i32_0 : i32, i32, i32
  }
  func.func @transform_1(%arg0: i32) -> (i32, i32) {
    %c0_i32 = arith.constant 0 : i32
    %c0_i32_0 = arith.constant 0 : i32
    %c0_i32_1 = arith.constant 0 : i32
    return %c0_i32, %c0_i32_0 : i32, i32
  }
  func.func @transform_2(%arg0: i32) -> (i32, i32) {
    %c0_i32 = arith.constant 0 : i32
    %c0_i32_0 = arith.constant 0 : i32
    %c0_i32_1 = arith.constant 0 : i32
    return %c0_i32, %c0_i32_0 : i32, i32
  }
  func.func @transform_3(%arg0: i32) -> (i32, i32) {
    %c0_i32 = arith.constant 0 : i32
    %c0_i32_0 = arith.constant 0 : i32
    return %arg0, %c0_i32 : i32, i32
  }
}

module attributes {stable_mosaic.version = 11 : i64} {
  func.func @_fc_fused_kernel(%arg0: i32, %arg1: memref<8x512xbf16, #tpu.memory_space<vmem>>, %arg2: memref<512x128xbf16, #tpu.memory_space<vmem>>, %arg3: memref<1x128xf32, #tpu.memory_space<vmem>>, %arg4: memref<128x128xbf16, #tpu.memory_space<vmem>>, %arg5: memref<1x128xf32, #tpu.memory_space<vmem>>, %arg6: memref<128x128xbf16, #tpu.memory_space<vmem>>, %arg7: memref<1x128xf32, #tpu.memory_space<vmem>>, %arg8: memref<8x128xf32, #tpu.memory_space<vmem>>) attributes {dimension_semantics = [#tpu.dimension_semantics<parallel>], iteration_bounds = array<i64: 1>, scalar_prefetch = 0 : i64, scratch_operands = 0 : i64, tpu.core_type = #tpu.core_type<tc>, window_params = [{transform_indices = @transform_0, window_bounds = array<i64: 8, 512>}, {pipeline_mode = #tpu.pipeline_mode<synchronous>, transform_indices = @transform_1, window_bounds = array<i64: 512, 128>}, {pipeline_mode = #tpu.pipeline_mode<synchronous>, transform_indices = @transform_2, window_bounds = array<i64: 1, 128>}, {pipeline_mode = #tpu.pipeline_mode<synchronous>, transform_indices = @transform_3, window_bounds = array<i64: 128, 128>}, {pipeline_mode = #tpu.pipeline_mode<synchronous>, transform_indices = @transform_4, window_bounds = array<i64: 1, 128>}, {pipeline_mode = #tpu.pipeline_mode<synchronous>, transform_indices = @transform_5, window_bounds = array<i64: 128, 128>}, {pipeline_mode = #tpu.pipeline_mode<synchronous>, transform_indices = @transform_6, window_bounds = array<i64: 1, 128>}, {transform_indices = @transform_7, window_bounds = array<i64: 8, 128>}]} {
    %c0 = arith.constant 0 : index
    %c0_0 = arith.constant 0 : index
    %0 = vector.load %arg1[%c0, %c0_0] : memref<8x512xbf16, #tpu.memory_space<vmem>>, vector<8x512xbf16>
    %c0_1 = arith.constant 0 : index
    %c0_2 = arith.constant 0 : index
    %1 = vector.load %arg2[%c0_1, %c0_2] : memref<512x128xbf16, #tpu.memory_space<vmem>>, vector<512x128xbf16>
    %cst = arith.constant dense<0.000000e+00> : vector<8x128xf32>
    %2 = tpu.matmul %0, %1, %cst {dimension_numbers = #tpu.dot_dimension_numbers<[1], [0], [0], [1], [0, 0, 1, 1], [], []>} : vector<8x512xbf16>, vector<512x128xbf16>, vector<8x128xf32> -> vector<8x128xf32>
    %c0_3 = arith.constant 0 : index
    %c0_4 = arith.constant 0 : index
    %3 = vector.load %arg3[%c0_3, %c0_4] : memref<1x128xf32, #tpu.memory_space<vmem>>, vector<1x128xf32>
    %4 = vector.broadcast %3 : vector<1x128xf32> to vector<8x128xf32>
    %5 = arith.addf %2, %4 : vector<8x128xf32>
    %cst_5 = arith.constant 0.000000e+00 : f32
    %6 = vector.broadcast %cst_5 : f32 to vector<8x128xf32>
    %7 = arith.maximumf %5, %6 : vector<8x128xf32>
    %8 = arith.truncf %7 : vector<8x128xf32> to vector<8x128xbf16>
    %c0_6 = arith.constant 0 : index
    %c0_7 = arith.constant 0 : index
    %9 = vector.load %arg4[%c0_6, %c0_7] : memref<128x128xbf16, #tpu.memory_space<vmem>>, vector<128x128xbf16>
    %cst_8 = arith.constant dense<0.000000e+00> : vector<8x128xf32>
    %10 = tpu.matmul %8, %9, %cst_8 {dimension_numbers = #tpu.dot_dimension_numbers<[1], [0], [0], [1], [0, 0, 1, 1], [], []>} : vector<8x128xbf16>, vector<128x128xbf16>, vector<8x128xf32> -> vector<8x128xf32>
    %c0_9 = arith.constant 0 : index
    %c0_10 = arith.constant 0 : index
    %11 = vector.load %arg5[%c0_9, %c0_10] : memref<1x128xf32, #tpu.memory_space<vmem>>, vector<1x128xf32>
    %12 = vector.broadcast %11 : vector<1x128xf32> to vector<8x128xf32>
    %13 = arith.addf %10, %12 : vector<8x128xf32>
    %cst_11 = arith.constant 0.000000e+00 : f32
    %14 = vector.broadcast %cst_11 : f32 to vector<8x128xf32>
    %15 = arith.maximumf %13, %14 : vector<8x128xf32>
    %16 = arith.truncf %15 : vector<8x128xf32> to vector<8x128xbf16>
    %c0_12 = arith.constant 0 : index
    %c0_13 = arith.constant 0 : index
    %17 = vector.load %arg6[%c0_12, %c0_13] : memref<128x128xbf16, #tpu.memory_space<vmem>>, vector<128x128xbf16>
    %cst_14 = arith.constant dense<0.000000e+00> : vector<8x128xf32>
    %18 = tpu.matmul %16, %17, %cst_14 {dimension_numbers = #tpu.dot_dimension_numbers<[1], [0], [0], [1], [0, 0, 1, 1], [], []>} : vector<8x128xbf16>, vector<128x128xbf16>, vector<8x128xf32> -> vector<8x128xf32>
    %c0_15 = arith.constant 0 : index
    %c0_16 = arith.constant 0 : index
    %19 = vector.load %arg7[%c0_15, %c0_16] : memref<1x128xf32, #tpu.memory_space<vmem>>, vector<1x128xf32>
    %20 = vector.broadcast %19 : vector<1x128xf32> to vector<8x128xf32>
    %21 = arith.addf %18, %20 : vector<8x128xf32>
    %c0_17 = arith.constant 0 : index
    %c0_18 = arith.constant 0 : index
    %22 = vector.load %arg8[%c0_17, %c0_18] : memref<8x128xf32, #tpu.memory_space<vmem>>, vector<8x128xf32>
    tpu.vector_store %arg8[%c0_17, %c0_18], %21 {strides = array<i32>} : memref<8x128xf32, #tpu.memory_space<vmem>>, vector<8x128xf32>,
    return
  }
  func.func @transform_0(%arg0: i32) -> (i32, i32) {
    %c0_i32 = arith.constant 0 : i32
    %c0_i32_0 = arith.constant 0 : i32
    return %arg0, %c0_i32 : i32, i32
  }
  func.func @transform_1(%arg0: i32) -> (i32, i32) {
    %c0_i32 = arith.constant 0 : i32
    %c0_i32_0 = arith.constant 0 : i32
    %c0_i32_1 = arith.constant 0 : i32
    return %c0_i32, %c0_i32_0 : i32, i32
  }
  func.func @transform_2(%arg0: i32) -> (i32, i32) {
    %c0_i32 = arith.constant 0 : i32
    %c0_i32_0 = arith.constant 0 : i32
    %c0_i32_1 = arith.constant 0 : i32
    return %c0_i32, %c0_i32_0 : i32, i32
  }
  func.func @transform_3(%arg0: i32) -> (i32, i32) {
    %c0_i32 = arith.constant 0 : i32
    %c0_i32_0 = arith.constant 0 : i32
    %c0_i32_1 = arith.constant 0 : i32
    return %c0_i32, %c0_i32_0 : i32, i32
  }
  func.func @transform_4(%arg0: i32) -> (i32, i32) {
    %c0_i32 = arith.constant 0 : i32
    %c0_i32_0 = arith.constant 0 : i32
    %c0_i32_1 = arith.constant 0 : i32
    return %c0_i32, %c0_i32_0 : i32, i32
  }
  func.func @transform_5(%arg0: i32) -> (i32, i32) {
    %c0_i32 = arith.constant 0 : i32
    %c0_i32_0 = arith.constant 0 : i32
    %c0_i32_1 = arith.constant 0 : i32
    return %c0_i32, %c0_i32_0 : i32, i32
  }
  func.func @transform_6(%arg0: i32) -> (i32, i32) {
    %c0_i32 = arith.constant 0 : i32
    %c0_i32_0 = arith.constant 0 : i32
    %c0_i32_1 = arith.constant 0 : i32
    return %c0_i32, %c0_i32_0 : i32, i32
  }
  func.func @transform_7(%arg0: i32) -> (i32, i32) {
    %c0_i32 = arith.constant 0 : i32
    %c0_i32_0 = arith.constant 0 : i32
    return %arg0, %c0_i32 : i32, i32
  }
}

</mosaic_0001>

<bundles_post_ra>
// kernel: net_forward.3
= control target key start
LH: loop header
LB: loop body
LE: loop exit
PB: predicated region body
PF: predicated region fallthrough
CT: control target
= control target key end

     0   :  { %s2451_s12 = smov 0   ;;  %s2453_s13 = smov 0   ;;  %s2932_s0 = inlined_call_operand.vmem [shape: bf16[4,400,75], index: 0, kind: input, shape index: {}]   ;;  %s2933_s1 = inlined_call_operand.vmem [shape: bf16[75,128], index: 1, kind: input, shape index: {}]   ;;  %s2934_s2 = inlined_call_operand.vmem [shape: f32[1,128], index: 2, kind: input, shape index: {}]   ;;  %s2935_s3 = inlined_call_operand.vmem [shape: bf16[400,128], index: 3, kind: output, shape index: {}]  }
   0x1   :  { %s2455_s14 = smov 0  }
   0x2 LB: > { %s1912_s15 = sadd.s32 4294967295, %s2428_s14   ;;  %s2468_s16 = sadd.s32 1, %s2428_s14   ;;  %s2428_s14 = sphi %s2455_s14, %s2950_s14   ;;  %s2424_s13 = sphi %s2453_s13, %s2949_s13   ;;  %s2420_s12 = sphi %s2451_s12, %s2948_s12  }
   0x3   : > { %s17_s17 = ssub.s32 %s2428_s14, %s2468_s16  ;;  %s20_s18 = sadd.s32 1, %s2424_s13 }
   0x4   : > { %p18_p0 = scmp.eq.s32.totalorder %s17_s17, 0  ;;  %p27_p1 = scmp.ne.s32.totalorder %s2424_s13, %s2420_s12 }
   0x5   : > { %p28_p2 = scmp.eq.s32.totalorder %s2428_s14, 0  ;;  %p1915_p4 = scmp.ge.s32.totalorder %s2428_s14, 2 }
   0x6   : > { %s2477_s19 = scalar_select %p18_p0, %s2424_s13, %s20_s18  }
   0x7   : > { %p29_p3 = por %p28_p2, %p27_p1  ;;  %127 = sbr.rel (%p1915_p4) target bundleno = 45 (0x2d), region = 24 }
   0xe   : > { %130 = sbr.rel (!%p29_p3) target bundleno = 45 (0x2d), region = 28  ;;  %s132_s20 = sand.u32 (%p29_p3), 1, %s2424_s13  }
   0xf   : > { %s2052_s21 = smul.u32 (%p29_p3), 100, %s2428_s14 }
  0x10   : > { %s2324_s22 = smul.u32 (%p29_p3), 400, %s132_s20 }
  0x11   : > { %s2485_s25 = scalar_lea.vmem (%p29_p3), %s2932_s0, %s2052_s21 }
  0x12   : > { %v153_v0 = vld [vmem:[%s2485_s25] sm:$0xff] (%p29_p3)   ;;  %v157_v1 = vld [vmem:[%s2485_s25 + $0x8] sm:$0xff] (%p29_p3)   ;;  %v161_v2 = vld [vmem:[%s2485_s25 + $0x10] sm:$0xff] (%p29_p3)   ;;  %s2490_s26 = scalar_lea.vmem (%p29_p3), [#allocation2], %s2324_s22 }
  0x13   : > { %154 = vst [vmem:[%s2490_s26] sm:$0xff] (%p29_p3), %v153_v0   ;;  %158 = vst [vmem:[%s2490_s26 + $0x8] sm:$0xff] (%p29_p3), %v157_v1   ;;  %v165_v3 = vld [vmem:[%s2485_s25 + $0x18] sm:$0xff] (%p29_p3)   ;;  %v169_v4 = vld [vmem:[%s2485_s25 + $0x20] sm:$0xff] (%p29_p3)  }
  0x14   : > { %162 = vst [vmem:[%s2490_s26 + $0x10] sm:$0xff] (%p29_p3), %v161_v2   ;;  %v173_v5 = vld [vmem:[%s2485_s25 + $0x28] sm:$0xff] (%p29_p3)   ;;  %166 = vst [vmem:[%s2490_s26 + $0x18] sm:$0xff] (%p29_p3), %v165_v3   ;;  %v177_v6 = vld [vmem:[%s2485_s25 + $0x30] sm:$0xff] (%p29_p3)  }
  0x15   : > { %170 = vst [vmem:[%s2490_s26 + $0x20] sm:$0xff] %v169_v4   ;;  %174 = vst [vmem:[%s2490_s26 + $0x28] sm:$0xff] %v173_v5   ;;  %v181_v7 = vld [vmem:[%s2485_s25 + $0x38] sm:$0xff]   ;;  %v185_v8 = vld [vmem:[%s2485_s25 + $0x40] sm:$0xff]  }
  0x16   : > { %178 = vst [vmem:[%s2490_s26 + $0x30] sm:$0xff] %v177_v6   ;;  %182 = vst [vmem:[%s2490_s26 + $0x38] sm:$0xff] %v181_v7   ;;  %v189_v9 = vld [vmem:[%s2485_s25 + $0x48] sm:$0xff]   ;;  %v193_v10 = vld [vmem:[%s2485_s25 + $0x50] sm:$0xff]  }
  0x17   : > { %186 = vst [vmem:[%s2490_s26 + $0x40] sm:$0xff] %v185_v8   ;;  %v197_v11 = vld [vmem:[%s2485_s25 + $0x58] sm:$0xff]   ;;  %190 = vst [vmem:[%s2490_s26 + $0x48] sm:$0xff] %v189_v9   ;;  %v201_v12 = vld [vmem:[%s2485_s25 + $0x60] sm:$0xf] }
  0x18   : > { %194 = vst [vmem:[%s2490_s26 + $0x50] sm:$0xff] %v193_v10   ;;  %198 = vst [vmem:[%s2490_s26 + $0x58] sm:$0xff] %v197_v11   ;;  %v203_v13 = vld [vmem:[%s2485_s25 + $0xc8] sm:$0xff]   ;;  %v207_v14 = vld [vmem:[%s2485_s25 + $0xd0] sm:$0xff]  }
  0x19   : > { %202 = vst [vmem:[%s2490_s26 + $0x60] sm:$0xf] %v201_v12  ;;  %204 = vst [vmem:[%s2490_s26 + $0x64] sm:$0xff] %v203_v13   ;;  %v211_v15 = vld [vmem:[%s2485_s25 + $0xd8] sm:$0xff]   ;;  %v215_v16 = vld [vmem:[%s2485_s25 + $0xe0] sm:$0xff]  }
  0x1a   : > { %208 = vst [vmem:[%s2490_s26 + $0x6c] sm:$0xff] %v207_v14   ;;  %v219_v17 = vld [vmem:[%s2485_s25 + $0xe8] sm:$0xff]   ;;  %212 = vst [vmem:[%s2490_s26 + $0x74] sm:$0xff] %v211_v15   ;;  %v223_v18 = vld [vmem:[%s2485_s25 + $0xf0] sm:$0xff]  }
  0x1b   : > { %216 = vst [vmem:[%s2490_s26 + $0x7c] sm:$0xff] %v215_v16   ;;  %220 = vst [vmem:[%s2490_s26 + $0x84] sm:$0xff] %v219_v17   ;;  %v227_v19 = vld [vmem:[%s2485_s25 + $0xf8] sm:$0xff]   ;;  %v231_v20 = vld [vmem:[%s2485_s25 + $0x100] sm:$0xff]  }
  0x1c   : > { %224 = vst [vmem:[%s2490_s26 + $0x8c] sm:$0xff] %v223_v18   ;;  %228 = vst [vmem:[%s2490_s26 + $0x94] sm:$0xff] %v227_v19   ;;  %v235_v21 = vld [vmem:[%s2485_s25 + $0x108] sm:$0xff]   ;;  %v239_v22 = vld [vmem:[%s2485_s25 + $0x110] sm:$0xff]  }
  0x1d   : > { %232 = vst [vmem:[%s2490_s26 + $0x9c] sm:$0xff] %v231_v20   ;;  %v243_v23 = vld [vmem:[%s2485_s25 + $0x118] sm:$0xff]   ;;  %236 = vst [vmem:[%s2490_s26 + $0xa4] sm:$0xff] %v235_v21   ;;  %v247_v24 = vld [vmem:[%s2485_s25 + $0x120] sm:$0xff]  }
  0x1e   : > { %240 = vst [vmem:[%s2490_s26 + $0xac] sm:$0xff] %v239_v22   ;;  %244 = vst [vmem:[%s2490_s26 + $0xb4] sm:$0xff] %v243_v23   ;;  %v251_v25 = vld [vmem:[%s2485_s25 + $0x128] sm:$0xf]  ;;  %v253_v26 = vld [vmem:[%s2485_s25 + $0x190] sm:$0xff]  }
  0x1f   : > { %248 = vst [vmem:[%s2490_s26 + $0xbc] sm:$0xff] %v247_v24   ;;  %252 = vst [vmem:[%s2490_s26 + $0xc4] sm:$0xf] %v251_v25  ;;  %v257_v27 = vld [vmem:[%s2485_s25 + $0x198] sm:$0xff]   ;;  %v261_v28 = vld [vmem:[%s2485_s25 + $0x1a0] sm:$0xff]  }
  0x20   : > { %254 = vst [vmem:[%s2490_s26 + $0xc8] sm:$0xff] %v253_v26   ;;  %v265_v29 = vld [vmem:[%s2485_s25 + $0x1a8] sm:$0xff]   ;;  %258 = vst [vmem:[%s2490_s26 + $0xd0] sm:$0xff] %v257_v27   ;;  %v269_v30 = vld [vmem:[%s2485_s25 + $0x1b0] sm:$0xff]  }
  0x21   : > { %262 = vst [vmem:[%s2490_s26 + $0xd8] sm:$0xff] %v261_v28   ;;  %266 = vst [vmem:[%s2490_s26 + $0xe0] sm:$0xff] %v265_v29   ;;  %v273_v31 = vld [vmem:[%s2485_s25 + $0x1b8] sm:$0xff]   ;;  %v277_v32 = vld [vmem:[%s2485_s25 + $0x1c0] sm:$0xff]  }
  0x22   : > { %270 = vst [vmem:[%s2490_s26 + $0xe8] sm:$0xff] %v269_v30   ;;  %274 = vst [vmem:[%s2490_s26 + $0xf0] sm:$0xff] %v273_v31   ;;  %v281_v33 = vld [vmem:[%s2485_s25 + $0x1c8] sm:$0xff]   ;;  %v285_v34 = vld [vmem:[%s2485_s25 + $0x1d0] sm:$0xff]  }
  0x23   : > { %278 = vst [vmem:[%s2490_s26 + $0xf8] sm:$0xff] %v277_v32   ;;  %v289_v35 = vld [vmem:[%s2485_s25 + $0x1d8] sm:$0xff]   ;;  %282 = vst [vmem:[%s2490_s26 + $0x100] sm:$0xff] %v281_v33   ;;  %v293_v36 = vld [vmem:[%s2485_s25 + $0x1e0] sm:$0xff]  }
  0x24   : > { %286 = vst [vmem:[%s2490_s26 + $0x108] sm:$0xff] %v285_v34   ;;  %290 = vst [vmem:[%s2490_s26 + $0x110] sm:$0xff] %v289_v35   ;;  %v297_v37 = vld [vmem:[%s2485_s25 + $0x1e8] sm:$0xff]   ;;  %v301_v38 = vld [vmem:[%s2485_s25 + $0x1f0] sm:$0xf] }
  0x25   : > { %294 = vst [vmem:[%s2490_s26 + $0x118] sm:$0xff] %v293_v36   ;;  %298 = vst [vmem:[%s2490_s26 + $0x120] sm:$0xff] %v297_v37   ;;  %v303_v39 = vld [vmem:[%s2485_s25 + $0x258] sm:$0xff]   ;;  %v307_v40 = vld [vmem:[%s2485_s25 + $0x260] sm:$0xff]  }
  0x26   : > { %302 = vst [vmem:[%s2490_s26 + $0x128] sm:$0xf] %v301_v38  ;;  %v311_v41 = vld [vmem:[%s2485_s25 + $0x268] sm:$0xff]   ;;  %304 = vst [vmem:[%s2490_s26 + $0x12c] sm:$0xff] %v303_v39   ;;  %v315_v42 = vld [vmem:[%s2485_s25 + $0x270] sm:$0xff]  }
  0x27   : > { %308 = vst [vmem:[%s2490_s26 + $0x134] sm:$0xff] %v307_v40   ;;  %312 = vst [vmem:[%s2490_s26 + $0x13c] sm:$0xff] %v311_v41   ;;  %v319_v43 = vld [vmem:[%s2485_s25 + $0x278] sm:$0xff]   ;;  %v323_v44 = vld [vmem:[%s2485_s25 + $0x280] sm:$0xff]  }
  0x28   : > { %316 = vst [vmem:[%s2490_s26 + $0x144] sm:$0xff] %v315_v42   ;;  %320 = vst [vmem:[%s2490_s26 + $0x14c] sm:$0xff] %v319_v43   ;;  %v327_v45 = vld [vmem:[%s2485_s25 + $0x288] sm:$0xff]   ;;  %v331_v46 = vld [vmem:[%s2485_s25 + $0x290] sm:$0xff]  }
  0x29   : > { %324 = vst [vmem:[%s2490_s26 + $0x154] sm:$0xff] %v323_v44   ;;  %v335_v47 = vld [vmem:[%s2485_s25 + $0x298] sm:$0xff]   ;;  %328 = vst [vmem:[%s2490_s26 + $0x15c] sm:$0xff] %v327_v45   ;;  %v339_v48 = vld [vmem:[%s2485_s25 + $0x2a0] sm:$0xff]  }
  0x2a   : > { %332 = vst [vmem:[%s2490_s26 + $0x164] sm:$0xff] %v331_v46   ;;  %336 = vst [vmem:[%s2490_s26 + $0x16c] sm:$0xff] %v335_v47   ;;  %v343_v49 = vld [vmem:[%s2485_s25 + $0x2a8] sm:$0xff]   ;;  %v347_v50 = vld [vmem:[%s2485_s25 + $0x2b0] sm:$0xff]  }
  0x2b   : > { %340 = vst [vmem:[%s2490_s26 + $0x174] sm:$0xff] %v339_v48   ;;  %344 = vst [vmem:[%s2490_s26 + $0x17c] sm:$0xff] %v343_v49   ;;  %v351_v51 = vld [vmem:[%s2485_s25 + $0x2b8] sm:$0xf] }
  0x2c   : > { %348 = vst [vmem:[%s2490_s26 + $0x184] sm:$0xff] %v347_v50   ;;  %352 = vst [vmem:[%s2490_s26 + $0x18c] sm:$0xf] %v351_v51 }
  0x2d PF: > { %p1917_p5 = scmp.ge.s32.totalorder %s2428_s14, 1  ;;  %p574_p6 = scmp.lt.s32.totalorder %s2428_s14, 3 }
  0x2f   : > { %p575_p7 = pnand %p1917_p5, %p574_p6 }
  0x31   : > { %578 = sbr.rel (%p575_p7) target bundleno = 399 (0x18f), region = 69 }
  0x38   : > { %v2351_v52 = vld [vmem:[%s2933_s1] sm:$0xff]   ;;  %v2352_v53 = vld [vmem:[%s2933_s1 + $0x8] sm:$0xff]   ;;  %vm1152_vm0 = vcmask 1044480   ;;  %v2353_v54 = vld [vmem:[%s2933_s1 + $0x10] sm:$0xff]   ;;  %s581_s6 = sand.u32 1, %s2420_s12   ;;  %vm1153_vm1 = vcmask 1045504  }
  0x39   : > { %2204 = vmatprep.subr.bf16.mxu0 %v2351_v52  ;;  %2314 = vmatprep.subr.bf16.mxu1 %v2351_v52  ;;  %v2430_v55 = vmov 65535   ;;  %s2325_s7 = smul.u32 400, %s581_s6  ;;  %v2354_v57 = vld [vmem:[%s2933_s1 + $0x18] sm:$0xff]   ;;  %v2355_v58 = vld [vmem:[%s2933_s1 + $0x20] sm:$0x3f]   ;;  %vm1001_vm2 = vcmask 613376  }
  0x3a   : > { %2205 = vmatpush3.bf16.msra.mxu0 %v2351_v52  ;;  %2319 = vmatpush3.bf16.msra.mxu1 %v2351_v52  ;;  %v1154_v56 = vsel %vm1152_vm0, 4294967295, %v2430_v55  ;;  %s605_s12 = smul.u32 25, %s1912_s15 }
  0x3b   : > { %2206 = vmatprep.subr.bf16.mxu0 %v2352_v53  ;;  %2315 = vmatprep.subr.bf16.mxu1 %v2352_v53  ;;  %v1155_v59 = vsel %vm1153_vm1, %v1154_v56, 0  ;;  %s2611_s17 = scalar_lea.vmem [#allocation2], %s2325_s7 }
  0x3c   : > { %v2356_v60 = vld [vmem:[%s2611_s17] sm:$0xff]   ;;  %v2357_v61 = vld [vmem:[%s2611_s17 + $0xd0] sm:$0xff]   ;;  %v1157_v62 = vand.u32 %v2355_v58, %v1155_v59  ;;  %v2358_v63 = vld [vmem:[%s2611_s17 + $0x8] sm:$0xff]   ;;  %p606_p8 = scmp.lt.s32.totalorder %s605_s12, 49 }
  0x3d   : > { %2214 = vmatprep.mubr.msk.bf16.mxu0 %vm1001_vm2, %v2356_v60  ;;  %2266 = vmatprep.mubr.msk.bf16.mxu1 %vm1001_vm2, %v2357_v61  ;;  %v2359_v0 = vld [vmem:[%s2611_s17 + $0xd8] sm:$0xff]   ;;  %v2360_v1 = vld [vmem:[%s2611_s17 + $0x10] sm:$0xff]   ;;  %v2361_v2 = vld [vmem:[%s2611_s17 + $0xe0] sm:$0xff]  }
  0x3e   : > { %2207 = vmatpush3.bf16.msra.mxu0 %v2352_v53  ;;  %2320 = vmatpush3.bf16.msra.mxu1 %v2352_v53  ;;  %v2362_v3 = vld [vmem:[%s2611_s17 + $0x18] sm:$0xff]   ;;  %v2363_v4 = vld [vmem:[%s2611_s17 + $0xe8] sm:$0xff]   ;;  %v2364_v5 = vld [vmem:[%s2611_s17 + $0x20] sm:$0xff]   ;;  %s2952_s12 = smov (!%p606_p8, %s605_s12), 49 }
  0x3f   : > { %2208 = vmatprep.subr.bf16.mxu0 %v2353_v54  ;;  %2316 = vmatprep.subr.bf16.mxu1 %v2353_v54  ;;  %v2365_v6 = vld [vmem:[%s2611_s17 + $0xf0] sm:$0xff]   ;;  %v2366_v7 = vld [vmem:[%s2611_s17 + $0x28] sm:$0xff]   ;;  %v2367_v8 = vld [vmem:[%s2611_s17 + $0xf8] sm:$0xff]   ;;  %s1918_s14 = sshll.u32 %s2952_s12, 2 }
  0x40   : > { %v2368_v9 = vld [vmem:[%s2611_s17 + $0x30] sm:$0xff]   ;;  %v2369_v10 = vld [vmem:[%s2611_s17 + $0x100] sm:$0xff]   ;;  %v2370_v11 = vld [vmem:[%s2611_s17 + $0x38] sm:$0xff]   ;;  %s2844_s22 = scalar_lea.vmem %s2935_s3, %s1918_s14 }
  0x41   : > { %v2371_v12 = vld [vmem:[%s2611_s17 + $0x108] sm:$0xff]   ;;  %v2372_v13 = vld [vmem:[%s2611_s17 + $0x40] sm:$0xff]   ;;  %v2373_v14 = vld [vmem:[%s2611_s17 + $0x110] sm:$0xff]  }
  0x42   : > { %2209 = vmatpush3.bf16.msra.mxu0 %v2353_v54  ;;  %2321 = vmatpush3.bf16.msra.mxu1 %v2353_v54  ;;  %v2374_v15 = vld [vmem:[%s2611_s17 + $0x48] sm:$0xff]   ;;  %v2375_v16 = vld [vmem:[%s2611_s17 + $0x118] sm:$0xff]   ;;  %v2376_v17 = vld [vmem:[%s2611_s17 + $0x50] sm:$0xff]  }
  0x43   : > { %2210 = vmatprep.subr.bf16.mxu0 %v2354_v57  ;;  %2317 = vmatprep.subr.bf16.mxu1 %v2354_v57  ;;  %v2377_v18 = vld [vmem:[%s2611_s17 + $0x120] sm:$0xff]   ;;  %v2378_v19 = vld [vmem:[%s2611_s17 + $0x58] sm:$0xff]   ;;  %v2379_v20 = vld [vmem:[%s2611_s17 + $0x128] sm:$0xff]  }
  0x44   : > { %v2380_v21 = vld [vmem:[%s2611_s17 + $0x60] sm:$0xff]   ;;  %v2381_v22 = vld [vmem:[%s2611_s17 + $0x130] sm:$0xff]   ;;  %v2382_v23 = vld [vmem:[%s2611_s17 + $0x68] sm:$0xff]  }
  0x45   : > { %v2383_v24 = vld [vmem:[%s2611_s17 + $0x138] sm:$0xff]   ;;  %v2384_v25 = vld [vmem:[%s2611_s17 + $0x70] sm:$0xff]   ;;  %v2385_v26 = vld [vmem:[%s2611_s17 + $0x140] sm:$0xff]  }
  0x46   : > { %2211 = vmatpush3.bf16.msra.mxu0 %v2354_v57  ;;  %2322 = vmatpush3.bf16.msra.mxu1 %v2354_v57  ;;  %v2386_v27 = vld [vmem:[%s2611_s17 + $0x78] sm:$0xff]   ;;  %v2387_v28 = vld [vmem:[%s2611_s17 + $0x148] sm:$0xff]   ;;  %v2388_v29 = vld [vmem:[%s2611_s17 + $0x80] sm:$0xff]  }
  0x47   : > { %2212 = vmatprep.subr.bf16.mxu0 %v1157_v62  ;;  %2318 = vmatprep.subr.bf16.mxu1 %v1157_v62  ;;  %v2389_v30 = vld [vmem:[%s2611_s17 + $0x150] sm:$0xff]   ;;  %v2390_v31 = vld [vmem:[%s2611_s17 + $0x88] sm:$0xff]   ;;  %v2391_v32 = vld [vmem:[%s2611_s17 + $0x158] sm:$0xff]  }
  0x48   : > { %v2392_v33 = vld [vmem:[%s2611_s17 + $0x90] sm:$0xff]   ;;  %v2393_v34 = vld [vmem:[%s2611_s17 + $0x160] sm:$0xff]   ;;  %v2394_v35 = vld [vmem:[%s2611_s17 + $0x98] sm:$0xff]  }
  0x49   : > { %v2395_v36 = vld [vmem:[%s2611_s17 + $0x168] sm:$0xff]   ;;  %v2396_v37 = vld [vmem:[%s2611_s17 + $0xa0] sm:$0xff]   ;;  %v2397_v38 = vld [vmem:[%s2611_s17 + $0x170] sm:$0xff]  }
  0x4a   : > { %2213 = vmatpush3.bf16.msra.mxu0 %v1157_v62  ;;  %2323 = vmatpush3.bf16.msra.mxu1 %v1157_v62  ;;  %v2398_v39 = vld [vmem:[%s2611_s17 + $0xa8] sm:$0xff]   ;;  %v2399_v40 = vld [vmem:[%s2611_s17 + $0x178] sm:$0xff]   ;;  %v2400_v41 = vld [vmem:[%s2611_s17 + $0xb0] sm:$0xff]  }
  0x4b   : > { %v2401_v42 = vld [vmem:[%s2611_s17 + $0x180] sm:$0xff]   ;;  %v2402_v43 = vld [vmem:[%s2611_s17 + $0xb8] sm:$0xff]   ;;  %v2403_v44 = vld [vmem:[%s2611_s17 + $0x188] sm:$0xff]  }
  0x4c   : > { %v2404_v45 = vld [vmem:[%s2611_s17 + $0xc0] sm:$0xff]   ;;  %v2405_v46 = vld [vmem:[%s2611_s17 + $0xc8] sm:$0xff]  }
  0x4d   : > { %2215 = vmatmul.mubr.msk.bf16.vlgmr.msra.gmra.mrb[0].mxu0 %vm1001_vm2, %v2358_v63  ;;  %2267 = vmatmul.mubr.msk.bf16.vlgmr.msra.gmra.mrb[0].mxu1 %vm1001_vm2, %v2359_v0 }
  0x4e   : > { %2218 = vmatprep.mubr.msk.bf16.mxu0 %vm1001_vm2, %v2360_v1  ;;  %2270 = vmatprep.mubr.msk.bf16.mxu1 %vm1001_vm2, %v2361_v2 }
  0x55   : > { %2219 = vmatmul.mubr.msk.bf16.gmra.mrb[4].mxu0 %vm1001_vm2, %v2362_v3  ;;  %2271 = vmatmul.mubr.msk.bf16.gmra.mrb[4].mxu1 %vm1001_vm2, %v2363_v4 }
  0x56   : > { %2222 = vmatprep.mubr.msk.bf16.mxu0 %vm1001_vm2, %v2364_v5  ;;  %2274 = vmatprep.mubr.msk.bf16.mxu1 %vm1001_vm2, %v2365_v6 }
  0x5d   : > { %2223 = vmatmul.mubr.msk.bf16.gmra.mrb[8].mxu0 %vm1001_vm2, %v2366_v7  ;;  %2275 = vmatmul.mubr.msk.bf16.gmra.mrb[8].mxu1 %vm1001_vm2, %v2367_v8 }
  0x5e   : > { %2226 = vmatprep.mubr.msk.bf16.mxu0 %vm1001_vm2, %v2368_v9  ;;  %2278 = vmatprep.mubr.msk.bf16.mxu1 %vm1001_vm2, %v2369_v10 }
  0x65   : > { %2227 = vmatmul.mubr.msk.bf16.gmra.mrb[12].mxu0 %vm1001_vm2, %v2370_v11  ;;  %2279 = vmatmul.mubr.msk.bf16.gmra.mrb[12].mxu1 %vm1001_vm2, %v2371_v12 }
  0x66   : > { %2230 = vmatprep.mubr.msk.bf16.mxu0 %vm1001_vm2, %v2372_v13  ;;  %2282 = vmatprep.mubr.msk.bf16.mxu1 %vm1001_vm2, %v2373_v14 }
  0x6d   : > { %2231 = vmatmul.mubr.msk.bf16.gmra.mrb[16].mxu0 %vm1001_vm2, %v2374_v15  ;;  %2283 = vmatmul.mubr.msk.bf16.gmra.mrb[16].mxu1 %vm1001_vm2, %v2375_v16 }
  0x6e   : > { %2234 = vmatprep.mubr.msk.bf16.mxu0 %vm1001_vm2, %v2376_v17  ;;  %2286 = vmatprep.mubr.msk.bf16.mxu1 %vm1001_vm2, %v2377_v18 }
  0x75   : > { %2235 = vmatmul.mubr.msk.bf16.gmra.mrb[20].mxu0 %vm1001_vm2, %v2378_v19  ;;  %2287 = vmatmul.mubr.msk.bf16.gmra.mrb[20].mxu1 %vm1001_vm2, %v2379_v20 }
  0x76   : > { %2238 = vmatprep.mubr.msk.bf16.mxu0 %vm1001_vm2, %v2380_v21  ;;  %2290 = vmatprep.mubr.msk.bf16.mxu1 %vm1001_vm2, %v2381_v22 }
  0x7d   : > { %2239 = vmatmul.mubr.msk.bf16.gmra.mrb[24].mxu0 %vm1001_vm2, %v2382_v23  ;;  %2291 = vmatmul.mubr.msk.bf16.gmra.mrb[24].mxu1 %vm1001_vm2, %v2383_v24 }
  0x7e   : > { %2242 = vmatprep.mubr.msk.bf16.mxu0 %vm1001_vm2, %v2384_v25  ;;  %2294 = vmatprep.mubr.msk.bf16.mxu1 %vm1001_vm2, %v2385_v26 }
  0x85   : > { %2243 = vmatmul.mubr.msk.bf16.gmra.mrb[28].mxu0 %vm1001_vm2, %v2386_v27  ;;  %2295 = vmatmul.mubr.msk.bf16.gmra.mrb[28].mxu1 %vm1001_vm2, %v2387_v28 }
  0x86   : > { %2246 = vmatprep.mubr.msk.bf16.mxu0 %vm1001_vm2, %v2388_v29  ;;  %2298 = vmatprep.mubr.msk.bf16.mxu1 %vm1001_vm2, %v2389_v30 }
  0x8d   : > { %2247 = vmatmul.mubr.msk.bf16.gmra.mrb[32].mxu0 %vm1001_vm2, %v2390_v31  ;;  %2299 = vmatmul.mubr.msk.bf16.gmra.mrb[32].mxu1 %vm1001_vm2, %v2391_v32 }
  0x8e   : > { %2250 = vmatprep.mubr.msk.bf16.mxu0 %vm1001_vm2, %v2392_v33  ;;  %2302 = vmatprep.mubr.msk.bf16.mxu1 %vm1001_vm2, %v2393_v34 }
  0x95   : > { %2251 = vmatmul.mubr.msk.bf16.gmra.mrb[36].mxu0 %vm1001_vm2, %v2394_v35  ;;  %2303 = vmatmul.mubr.msk.bf16.gmra.mrb[36].mxu1 %vm1001_vm2, %v2395_v36 }
  0x96   : > { %2254 = vmatprep.mubr.msk.bf16.mxu0 %vm1001_vm2, %v2396_v37  ;;  %2306 = vmatprep.mubr.msk.bf16.mxu1 %vm1001_vm2, %v2397_v38 }
  0x9d   : > { %2255 = vmatmul.mubr.msk.bf16.gmra.mrb[40].mxu0 %vm1001_vm2, %v2398_v39  ;;  %2307 = vmatmul.mubr.msk.bf16.gmra.mrb[40].mxu1 %vm1001_vm2, %v2399_v40 }
  0x9e   : > { %2258 = vmatprep.mubr.msk.bf16.mxu0 %vm1001_vm2, %v2400_v41  ;;  %2310 = vmatprep.mubr.msk.bf16.mxu1 %vm1001_vm2, %v2401_v42 }
  0xa5   : > { %2259 = vmatmul.mubr.msk.bf16.gmra.mrb[44].mxu0 %vm1001_vm2, %v2402_v43  ;;  %2311 = vmatmul.mubr.msk.bf16.gmra.mrb[44].mxu1 %vm1001_vm2, %v2403_v44 }
  0xa6   : > { %2262 = vmatprep.mubr.msk.bf16.mxu0 %vm1001_vm2, %v2404_v45 }
  0xad   : > { %2263 = vmatmul.mubr.msk.bf16.gmra.mrb[48].mxu0 %vm1001_vm2, %v2405_v46  ;;  %v2827_v46 = vld [vmem:[%s2934_s2] ss:$0 sm:$0xff] }
 0x120   : > { %v2713_v47 = vpop.f32.mrb[0].mxu0  ;;  %v2715_v48 = vpop.f32.mrb[0].mxu1 }
 0x121   : > { %v2717_v49 = vpop.f32.mrb[1].mxu0  ;;  %v1401_v50 = vpop.f32.mrb[1].mxu1 }
 0x122   : > { %v2719_v51 = vpop.f32.mrb[2].mxu0  ;;  %v2721_v52 = vpop.f32.mrb[2].mxu1 }
 0x123   : > { %v2723_v53 = vpop.f32.mrb[3].mxu0  ;;  %v2725_v54 = vpop.f32.mrb[3].mxu1 }
 0x124   : > { %2938 = vst [vmem:[#allocation3_spill] sm:$0xff] %v2723_v53 }
 0x128   : > { %v2727_v55 = vpop.f32.mrb[4].mxu0  ;;  %v2729_v56 = vpop.f32.mrb[4].mxu1 }
 0x129   : > { %v2731_v57 = vpop.f32.mrb[5].mxu0  ;;  %v2733_v58 = vpop.f32.mrb[5].mxu1 }
 0x12a   : > { %v2735_v59 = vpop.f32.mrb[6].mxu0  ;;  %v2737_v60 = vpop.f32.mrb[6].mxu1 }
 0x12b   : > { %v2739_v61 = vpop.f32.mrb[7].mxu0  ;;  %v2741_v62 = vpop.f32.mrb[7].mxu1 }
 0x130   : > { %v2743_v63 = vpop.f32.mrb[8].mxu0  ;;  %v2745_v0 = vpop.f32.mrb[8].mxu1 }
 0x131   : > { %v2747_v1 = vpop.f32.mrb[9].mxu0  ;;  %v2749_v2 = vpop.f32.mrb[9].mxu1 }
 0x132   : > { %v2751_v3 = vpop.f32.mrb[10].mxu0  ;;  %v2753_v4 = vpop.f32.mrb[10].mxu1 }
 0x133   : > { %v2755_v5 = vpop.f32.mrb[11].mxu0  ;;  %v2757_v6 = vpop.f32.mrb[11].mxu1 }
 0x138   : > { %v2759_v7 = vpop.f32.mrb[12].mxu0  ;;  %v2761_v8 = vpop.f32.mrb[12].mxu1 }
 0x139   : > { %v2763_v9 = vpop.f32.mrb[13].mxu0  ;;  %v2765_v10 = vpop.f32.mrb[13].mxu1 }
 0x13a   : > { %v2767_v11 = vpop.f32.mrb[14].mxu0  ;;  %v2769_v12 = vpop.f32.mrb[14].mxu1 }
 0x13b   : > { %v2771_v13 = vpop.f32.mrb[15].mxu0  ;;  %v2773_v14 = vpop.f32.mrb[15].mxu1 }
 0x140   : > { %v2775_v15 = vpop.f32.mrb[16].mxu0  ;;  %v2777_v16 = vpop.f32.mrb[16].mxu1 }
 0x141   : > { %v2779_v17 = vpop.f32.mrb[17].mxu0  ;;  %v2781_v18 = vpop.f32.mrb[17].mxu1 }
 0x142   : > { %v2783_v19 = vpop.f32.mrb[18].mxu0  ;;  %v2785_v20 = vpop.f32.mrb[18].mxu1 }
 0x143   : > { %v2787_v21 = vpop.f32.mrb[19].mxu0  ;;  %v2789_v22 = vpop.f32.mrb[19].mxu1 }
 0x148   : > { %v2791_v23 = vpop.f32.mrb[20].mxu0  ;;  %v2793_v24 = vpop.f32.mrb[20].mxu1 }
 0x149   : > { %v2795_v25 = vpop.f32.mrb[21].mxu0  ;;  %v2797_v26 = vpop.f32.mrb[21].mxu1 }
 0x14a   : > { %v2799_v27 = vpop.f32.mrb[22].mxu0  ;;  %v2801_v28 = vpop.f32.mrb[22].mxu1 }
 0x14b   : > { %v2803_v29 = vpop.f32.mrb[23].mxu0  ;;  %v2805_v30 = vpop.f32.mrb[23].mxu1 }
 0x150   : > { %v2807_v31 = vpop.f32.mrb[24].mxu0  ;;  %v2292_v32 = vpop.f32.mrb[24].mxu1 }
 0x151   : > { %2939 = vst [vmem:[#allocation4_spill] sm:$0xff] %v2807_v31  ;;  %v1620_v34 = vmax.f32 %v2725_v54, %v2292_v32  ;;  %v2812_v35 = vpop.f32.mrb[25].mxu0  ;;  %v2814_v36 = vpop.f32.mrb[25].mxu1 }
 0x152   : > { %2940 = vst [vmem:[#allocation5_spill] sm:$0xff] %v2812_v35  ;;  %2941 = vst [vmem:[#allocation6_spill] sm:$0xff] %v2814_v36  ;;  %v2241_v37 = vpop.f32.mrb[26].mxu0  ;;  %v2293_v38 = vpop.f32.mrb[26].mxu1 }
 0x153   : > { %v1594_v39 = vmax.f32 %v2713_v47, %v2241_v37  ;;  %v1621_v40 = vmax.f32 %v2715_v48, %v2293_v38  ;;  %v2820_v41 = vpop.f32.mrb[27].mxu0  ;;  %v1500_v42 = vpop.f32.mrb[27].mxu1 }
 0x154   : > { %v1619_v44 = vmax.f32 %v1401_v50, %v1500_v42 }
 0x156   : > { %v1644_v45 = vmax.f32 %v1594_v39, %v1619_v44 }
 0x158   : > { %v2244_v54 = vpop.f32.mrb[28].mxu0  ;;  %v2296_v32 = vpop.f32.mrb[28].mxu1  ;;  %v1676_v44 = vadd.f32 %v2827_v46, %v1644_v45 }
 0x159   : > { %v1597_v47 = vmax.f32 %v2739_v61, %v2244_v54  ;;  %v1624_v48 = vmax.f32 %v2741_v62, %v2296_v32  ;;  %v1305_v37 = vpop.f32.mrb[29].mxu0  ;;  %v1513_v38 = vpop.f32.mrb[29].mxu1 }
 0x15a   : > { %v1595_v33 = vmax.f32 %v2719_v51, %v1305_v37  ;;  %v1622_v50 = vmax.f32 %v2721_v52, %v1513_v38  ;;  %v2245_v39 = vpop.f32.mrb[30].mxu0  ;;  %v2297_v42 = vpop.f32.mrb[30].mxu1  ;;  %v1701_v45 = vmax.f32 %v1676_v44, 0.0 }
 0x15b   : > { %v1598_v43 = vmax.f32 %v2727_v55, %v2245_v39  ;;  %v1625_v31 = vmax.f32 %v2729_v56, %v2297_v42  ;;  %v1308_v53 = vpop.f32.mrb[31].mxu0  ;;  %v1516_v35 = vpop.f32.mrb[31].mxu1 }
 0x15c   : > { %v1645_v61 = vmax.f32 %v1595_v33, %v1620_v34  ;;  %v1647_v54 = vmax.f32 %v1597_v47, %v1622_v50  ;;  %v1596_v62 = vmax.f32 %v2731_v57, %v1308_v53  ;;  %v1623_v32 = vmax.f32 %v2733_v58, %v1516_v35 }
 0x15e   : > { %v1677_v51 = vadd.f32 %v2827_v46, %v1645_v61  ;;  %v1679_v52 = vadd.f32 %v2827_v46, %v1647_v54  ;;  %v1646_v37 = vmax.f32 %v1596_v62, %v1621_v40  ;;  %v1648_v38 = vmax.f32 %v1598_v43, %v1623_v32 }
 0x160   : > { %v1702_v36 = vmax.f32 %v1677_v51, 0.0  ;;  %v1678_v55 = vadd.f32 %v2827_v46, %v1646_v37  ;;  %v2248_v56 = vpop.f32.mrb[32].mxu0  ;;  %v2300_v39 = vpop.f32.mrb[32].mxu1  ;;  %v1704_v35 = vmax.f32 %v1679_v52, 0.0  ;;  %v1680_v42 = vadd.f32 %v2827_v46, %v1648_v38 }
 0x161   : > { %v1601_v53 = vmax.f32 %v2755_v5, %v2248_v56  ;;  %v1628_v57 = vmax.f32 %v2757_v6, %v2300_v39  ;;  %v1321_v58 = vpop.f32.mrb[33].mxu0  ;;  %v1529_v33 = vpop.f32.mrb[33].mxu1 }
 0x162   : > { %v2086_v34 = vpack.c.bf16 %v1702_v36, %v1701_v45  ;;  %v1703_v40 = vmax.f32 %v1678_v55, 0.0  ;;  %v1599_v43 = vmax.f32 %v2735_v59, %v1321_v58  ;;  %v2249_v47 = vpop.f32.mrb[34].mxu0  ;;  %v2301_v50 = vpop.f32.mrb[34].mxu1  ;;  %v1626_v44 = vmax.f32 %v2737_v60, %v1529_v33 }
 0x163   : > { %v1602_v61 = vmax.f32 %v2743_v63, %v2249_v47  ;;  %v1629_v5 = vmax.f32 %v2745_v0, %v2301_v50  ;;  %v1324_v54 = vpop.f32.mrb[35].mxu0  ;;  %v1532_v6 = vpop.f32.mrb[35].mxu1  ;;  %v1705_v63 = vmax.f32 %v1680_v42, 0.0 }
 0x164   : > { %2138 = vst [vmem:[%s2844_s22 + $0x8] sm:$0xff] %v2086_v34   ;;  %v2091_v62 = vpack.c.bf16 %v1704_v35, %v1703_v40  ;;  %v1649_v36 = vmax.f32 %v1599_v43, %v1624_v48  ;;  %v1600_v32 = vmax.f32 %v2747_v1, %v1324_v54  ;;  %v1627_v51 = vmax.f32 %v2749_v2, %v1532_v6 }
 0x165   : > { %v1651_v59 = vmax.f32 %v1601_v53, %v1626_v44 }
 0x166   : > { %2139 = vst [vmem:[%s2844_s22 + $0x10] sm:$0xff] %v2091_v62   ;;  %v1681_v52 = vadd.f32 %v2827_v46, %v1649_v36  ;;  %v1650_v37 = vmax.f32 %v1600_v32, %v1625_v31  ;;  %v1652_v38 = vmax.f32 %v1602_v61, %v1627_v51 }
 0x167   : > { %v1683_v60 = vadd.f32 %v2827_v46, %v1651_v59 }
 0x168   : > { %v1706_v45 = vmax.f32 %v1681_v52, 0.0  ;;  %v1682_v0 = vadd.f32 %v2827_v46, %v1650_v37  ;;  %v2252_v55 = vpop.f32.mrb[36].mxu0  ;;  %v2304_v56 = vpop.f32.mrb[36].mxu1  ;;  %v1684_v40 = vadd.f32 %v2827_v46, %v1652_v38 }
 0x169   : > { %v1605_v48 = vmax.f32 %v2771_v13, %v2252_v55  ;;  %v1632_v1 = vmax.f32 %v2773_v14, %v2304_v56  ;;  %v1337_v2 = vpop.f32.mrb[37].mxu0  ;;  %v1545_v39 = vpop.f32.mrb[37].mxu1  ;;  %v1708_v58 = vmax.f32 %v1683_v60, 0.0 }
 0x16a   : > { %v2096_v53 = vpack.c.bf16 %v1706_v45, %v1705_v63  ;;  %v1707_v33 = vmax.f32 %v1682_v0, 0.0  ;;  %v1603_v31 = vmax.f32 %v2751_v3, %v1337_v2  ;;  %v2253_v34 = vpop.f32.mrb[38].mxu0  ;;  %v2305_v35 = vpop.f32.mrb[38].mxu1  ;;  %v1630_v43 = vmax.f32 %v2753_v4, %v1545_v39 }
 0x16b   : > { %v1606_v47 = vmax.f32 %v2759_v7, %v2253_v34  ;;  %v1633_v13 = vmax.f32 %v2761_v8, %v2305_v35  ;;  %v1340_v50 = vpop.f32.mrb[39].mxu0  ;;  %v1548_v14 = vpop.f32.mrb[39].mxu1  ;;  %v1709_v7 = vmax.f32 %v1684_v40, 0.0 }
 0x16c   : > { %2140 = vst [vmem:[%s2844_s22 + $0x18] sm:$0xff] %v2096_v53   ;;  %v2101_v42 = vpack.c.bf16 %v1708_v58, %v1707_v33  ;;  %v1653_v44 = vmax.f32 %v1603_v31, %v1628_v57  ;;  %v1604_v61 = vmax.f32 %v2763_v9, %v1340_v50  ;;  %v1631_v54 = vmax.f32 %v2765_v10, %v1548_v14 }
 0x16d   : > { %v1655_v3 = vmax.f32 %v1605_v48, %v1630_v43 }
 0x16e   : > { %2141 = vst [vmem:[%s2844_s22 + $0x20] sm:$0xff] %v2101_v42   ;;  %v1685_v6 = vadd.f32 %v2827_v46, %v1653_v44  ;;  %v1654_v62 = vmax.f32 %v1604_v61, %v1629_v5  ;;  %v1656_v36 = vmax.f32 %v1606_v47, %v1631_v54 }
 0x16f   : > { %v1687_v4 = vadd.f32 %v2827_v46, %v1655_v3 }
 0x170   : > { %v1710_v32 = vmax.f32 %v1685_v6, 0.0  ;;  %v1686_v8 = vadd.f32 %v2827_v46, %v1654_v62  ;;  %v2256_v51 = vpop.f32.mrb[40].mxu0  ;;  %v2308_v59 = vpop.f32.mrb[40].mxu1  ;;  %v1688_v0 = vadd.f32 %v2827_v46, %v1656_v36 }
 0x171   : > { %v1609_v57 = vmax.f32 %v2787_v21, %v2256_v51  ;;  %v1636_v9 = vmax.f32 %v2789_v22, %v2308_v59  ;;  %v1353_v10 = vpop.f32.mrb[41].mxu0  ;;  %v1561_v52 = vpop.f32.mrb[41].mxu1  ;;  %v1712_v38 = vmax.f32 %v1687_v4, 0.0 }
 0x172   : > { %v2106_v37 = vpack.c.bf16 %v1710_v32, %v1709_v7  ;;  %v1711_v60 = vmax.f32 %v1686_v8, 0.0  ;;  %v1607_v5 = vmax.f32 %v2767_v11, %v1353_v10  ;;  %v2257_v63 = vpop.f32.mrb[42].mxu0  ;;  %v2309_v45 = vpop.f32.mrb[42].mxu1  ;;  %v1634_v55 = vmax.f32 %v2769_v12, %v1561_v52 }
 0x173   : > { %v1610_v56 = vmax.f32 %v2775_v15, %v2257_v63  ;;  %v1637_v21 = vmax.f32 %v2777_v16, %v2309_v45  ;;  %v1356_v48 = vpop.f32.mrb[43].mxu0  ;;  %v1564_v22 = vpop.f32.mrb[43].mxu1  ;;  %v1713_v15 = vmax.f32 %v1688_v0, 0.0  ;;  %v2943_v45 = vld [vmem:[#allocation6_spill] sm:$0xff] }
 0x174   : > { %2142 = vst [vmem:[%s2844_s22 + $0x28] sm:$0xff] %v2106_v37   ;;  %v2111_v2 = vpack.c.bf16 %v1712_v38, %v1711_v60  ;;  %v1657_v39 = vmax.f32 %v1607_v5, %v1632_v1  ;;  %v1608_v53 = vmax.f32 %v2779_v17, %v1356_v48  ;;  %v1635_v58 = vmax.f32 %v2781_v18, %v1564_v22  ;;  %v2944_v48 = vld [vmem:[#allocation5_spill] sm:$0xff] }
 0x175   : > { %v1659_v11 = vmax.f32 %v1609_v57, %v1634_v55  ;;  %v2942_v5 = vmax.f32 %v2717_v49, %v2820_v41 }
 0x176   : > { %2143 = vst [vmem:[%s2844_s22 + $0x30] sm:$0xff] %v2111_v2   ;;  %v1689_v33 = vadd.f32 %v2827_v46, %v1657_v39  ;;  %v1658_v31 = vmax.f32 %v1608_v53, %v1633_v13  ;;  %v1660_v34 = vmax.f32 %v1610_v56, %v1635_v58  ;;  %v2945_v39 = vld [vmem:[#allocation3_spill] sm:$0xff] }
 0x177   : > { %v1691_v12 = vadd.f32 %v2827_v46, %v1659_v11 }
 0x178   : > { %v1714_v35 = vmax.f32 %v1689_v33, 0.0  ;;  %v1690_v16 = vadd.f32 %v2827_v46, %v1658_v31  ;;  %v2260_v40 = vpop.f32.mrb[44].mxu0  ;;  %v2312_v43 = vpop.f32.mrb[44].mxu1  ;;  %v1692_v54 = vadd.f32 %v2827_v46, %v1660_v34 }
 0x179   : > { %v1613_v1 = vmax.f32 %v2803_v29, %v2260_v40  ;;  %v1640_v17 = vmax.f32 %v2805_v30, %v2312_v43  ;;  %v1369_v18 = vpop.f32.mrb[45].mxu0  ;;  %v1577_v47 = vpop.f32.mrb[45].mxu1  ;;  %v1716_v14 = vmax.f32 %v1691_v12, 0.0 }
 0x17a   : > { %v2116_v50 = vpack.c.bf16 %v1714_v35, %v1713_v15  ;;  %v1715_v42 = vmax.f32 %v1690_v16, 0.0  ;;  %v1611_v13 = vmax.f32 %v2783_v19, %v1369_v18  ;;  %v2261_v44 = vpop.f32.mrb[46].mxu0  ;;  %v2313_v61 = vpop.f32.mrb[46].mxu1  ;;  %v1638_v3 = vmax.f32 %v2785_v20, %v1577_v47 }
 0x17b   : > { %v1614_v6 = vmax.f32 %v2791_v23, %v2261_v44  ;;  %v1641_v29 = vmax.f32 %v2793_v24, %v2313_v61  ;;  %v1372_v62 = vpop.f32.mrb[47].mxu0  ;;  %v1580_v30 = vpop.f32.mrb[47].mxu1  ;;  %v1717_v23 = vmax.f32 %v1692_v54, 0.0 }
 0x17c   : > { %2144 = vst [vmem:[%s2844_s22 + $0x38] sm:$0xff] %v2116_v50   ;;  %v2121_v36 = vpack.c.bf16 %v1716_v14, %v1715_v42  ;;  %v1661_v4 = vmax.f32 %v1611_v13, %v1636_v9  ;;  %v1612_v7 = vmax.f32 %v2795_v25, %v1372_v62  ;;  %v1639_v32 = vmax.f32 %v2797_v26, %v1580_v30 }
 0x17d   : > { %v1663_v19 = vmax.f32 %v1613_v1, %v1638_v3 }
 0x17e   : > { %2145 = vst [vmem:[%s2844_s22 + $0x40] sm:$0xff] %v2121_v36   ;;  %v1693_v8 = vadd.f32 %v2827_v46, %v1661_v4  ;;  %v1662_v51 = vmax.f32 %v1612_v7, %v1637_v21  ;;  %v1664_v59 = vmax.f32 %v1614_v6, %v1639_v32 }
 0x17f   : > { %v1695_v20 = vadd.f32 %v2827_v46, %v1663_v19 }
 0x180   : > { %v1718_v24 = vmax.f32 %v1693_v8, 0.0  ;;  %v1694_v57 = vadd.f32 %v2827_v46, %v1662_v51  ;;  %v2264_v10 = vpop.f32.mrb[48].mxu0  ;;  %v1696_v21 = vadd.f32 %v2827_v46, %v1664_v59 }
 0x181   : > { %v1617_v9 = vmax.f32 %v2264_v10, %v2801_v28  ;;  %v1385_v52 = vpop.f32.mrb[49].mxu0  ;;  %v1720_v26 = vmax.f32 %v1695_v20, 0.0 }
 0x182   : > { %v2126_v25 = vpack.c.bf16 %v1718_v24, %v1717_v23  ;;  %v1719_v37 = vmax.f32 %v1694_v57, 0.0  ;;  %v1615_v38 = vmax.f32 %v2799_v27, %v1385_v52  ;;  %v2265_v60 = vpop.f32.mrb[50].mxu0  ;;  %v2946_v27 = vld [vmem:[#allocation4_spill] sm:$0xff]  ;;  %v1721_v33 = vmax.f32 %v1696_v21, 0.0 }
 0x183   : > { %v1642_v63 = vmax.f32 %v2942_v5, %v1617_v9  ;;  %v1618_v0 = vmax.f32 %v2265_v60, %v2943_v45  ;;  %v1388_v55 = vpop.f32.mrb[51].mxu0  ;;  %v2947_v53 = vmax.f32 %v2945_v39, %v2946_v27 }
 0x184   : > { %2146 = vst [vmem:[%s2844_s22 + $0x48] sm:$0xff] %v2126_v25   ;;  %v2131_v56 = vpack.c.bf16 %v1720_v26, %v1719_v37  ;;  %v1665_v28 = vmax.f32 %v1615_v38, %v1640_v17  ;;  %v1616_v22 = vmax.f32 %v2944_v48, %v1388_v55 }
 0x185   : > { %v1674_v2 = vadd.f32 %v2827_v46, %v1642_v63  ;;  %v1643_v58 = vmax.f32 %v2947_v53, %v1618_v0 }
 0x186   : > { %2147 = vst [vmem:[%s2844_s22 + $0x50] sm:$0xff] %v2131_v56   ;;  %v1697_v49 = vadd.f32 %v2827_v46, %v1665_v28  ;;  %v1666_v41 = vmax.f32 %v1616_v22, %v1641_v29 }
 0x187   : > { %v1675_v11 = vadd.f32 %v2827_v46, %v1643_v58  ;;  %v1699_v12 = vmax.f32 %v1674_v2, 0.0 }
 0x188   : > { %v1722_v31 = vmax.f32 %v1697_v49, 0.0  ;;  %v1698_v34 = vadd.f32 %v2827_v46, %v1666_v41 }
 0x189   : > { %v1700_v15 = vmax.f32 %v1675_v11, 0.0 }
 0x18a   : > { %v2136_v35 = vpack.c.bf16 %v1722_v31, %v1721_v33  ;;  %v1723_v16 = vmax.f32 %v1698_v34, 0.0 }
 0x18b   : > { %v2081_v40 = vpack.c.bf16 %v1700_v15, %v1699_v12 }
 0x18c   : > { %2148 = vst [vmem:[%s2844_s22 + $0x58] sm:$0xff] %v2136_v35   ;;  %v2077_v43 = vpack.c.bf16 %v1723_v16, %v1723_v16 }
 0x18d   : > { %2082 = vst [vmem:[%s2844_s22] sm:$0xff] %v2081_v40  }
 0x18e   : > { %1849 = vst [vmem:[%s2844_s22 + $0x60] sm:$0xf] %v2077_v43 }
 0x18f PF: > { %p10_p9 = scmp.ge.s32.totalorder %s2468_s16, 4   ;;  %s2948_s12 = smov %s2424_s13 }
 0x190   : > { %s2949_s13 = smov %s2477_s19  ;;  %s2950_s14 = smov %s2468_s16 }
 0x191   :  { %12 = sbr.rel (!%p10_p9) target bundleno = 2 (0x2), region = 108 }

// kernel: net_forward.4
= control target key start
LH: loop header
LB: loop body
LE: loop exit
PB: predicated region body
PF: predicated region fallthrough
CT: control target
= control target key end

     0   :  { %s863_s12 = smov 0   ;;  %s865_s13 = smov 0   ;;  %s992_s0 = inlined_call_operand.vmem [shape: bf16[4,64,150], index: 0, kind: input, shape index: {}]   ;;  %s993_s1 = inlined_call_operand.vmem [shape: bf16[150,128], index: 1, kind: input, shape index: {}]   ;;  %s994_s2 = inlined_call_operand.vmem [shape: f32[1,128], index: 2, kind: input, shape index: {}]   ;;  %s995_s3 = inlined_call_operand.vmem [shape: bf16[64,128], index: 3, kind: output, shape index: {}]  }
   0x1   :  { %s867_s14 = smov 0  }
   0x2 LB: > { %s669_s15 = sadd.s32 4294967295, %s840_s14   ;;  %s880_s16 = sadd.s32 1, %s840_s14   ;;  %s840_s14 = sphi %s867_s14, %s998_s14   ;;  %s836_s13 = sphi %s865_s13, %s997_s13   ;;  %s832_s12 = sphi %s863_s12, %s996_s12  }
   0x3   : > { %s17_s17 = ssub.s32 %s840_s14, %s880_s16  ;;  %s20_s18 = sadd.s32 1, %s836_s13 }
   0x4   : > { %p18_p0 = scmp.eq.s32.totalorder %s17_s17, 0  ;;  %p27_p1 = scmp.ne.s32.totalorder %s836_s13, %s832_s12 }
   0x5   : > { %p28_p2 = scmp.eq.s32.totalorder %s840_s14, 0  ;;  %p672_p4 = scmp.ge.s32.totalorder %s840_s14, 2 }
   0x6   : > { %s889_s19 = scalar_select %p18_p0, %s836_s13, %s20_s18  }
   0x7   : > { %p29_p3 = por %p28_p2, %p27_p1  ;;  %127 = sbr.rel (%p672_p4) target bundleno = 26 (0x1a), region = 24 }
   0xe   : > { %130 = sbr.rel (!%p29_p3) target bundleno = 26 (0x1a), region = 28  ;;  %s132_s20 = sand.u32 (%p29_p3), 1, %s836_s13  }
   0xf   : > { %s723_s21 = sshll.u32 (%p29_p3), %s840_s14, 5  ;;  %s673_s22 = sshll.u32 (%p29_p3), %s132_s20, 7 }
  0x10   : > { %s897_s25 = scalar_lea.vmem (%p29_p3), %s992_s0, %s723_s21  ;;  %s134_s26 = scalar_lea.vmem (%p29_p3), [#allocation2], %s673_s22 }
  0x11   : > { %v196_v0 = vld [vmem:[%s897_s25] sm:$0xff] (%p29_p3)  ;;  %v198_v1 = vld [vmem:[%s897_s25 + $0x8] sm:$0xff] (%p29_p3)  ;;  %v200_v2 = vld [vmem:[%s897_s25 + $0x10] sm:$0xff] (%p29_p3) }
  0x12   : > { %197 = vst [vmem:[%s134_s26] sm:$0xff] (%p29_p3), %v196_v0  ;;  %199 = vst [vmem:[%s134_s26 + $0x8] sm:$0xff] (%p29_p3), %v198_v1  ;;  %v202_v3 = vld [vmem:[%s897_s25 + $0x18] sm:$0xff] (%p29_p3)  ;;  %v204_v4 = vld [vmem:[%s897_s25 + $0x40] sm:$0xff] (%p29_p3) }
  0x13   : > { %201 = vst [vmem:[%s134_s26 + $0x10] sm:$0xff] (%p29_p3), %v200_v2  ;;  %v206_v5 = vld [vmem:[%s897_s25 + $0x48] sm:$0xff] (%p29_p3)  ;;  %203 = vst [vmem:[%s134_s26 + $0x18] sm:$0xff] (%p29_p3), %v202_v3  ;;  %v208_v6 = vld [vmem:[%s897_s25 + $0x50] sm:$0xff] (%p29_p3) }
  0x14   : > { %205 = vst [vmem:[%s134_s26 + $0x20] sm:$0xff] (%p29_p3), %v204_v4  ;;  %207 = vst [vmem:[%s134_s26 + $0x28] sm:$0xff] (%p29_p3), %v206_v5  ;;  %v210_v7 = vld [vmem:[%s897_s25 + $0x58] sm:$0xff] (%p29_p3)  ;;  %v212_v8 = vld [vmem:[%s897_s25 + $0x80] sm:$0xff] (%p29_p3) }
  0x15   : > { %209 = vst [vmem:[%s134_s26 + $0x30] sm:$0xff] %v208_v6  ;;  %211 = vst [vmem:[%s134_s26 + $0x38] sm:$0xff] %v210_v7  ;;  %v214_v9 = vld [vmem:[%s897_s25 + $0x88] sm:$0xff]  ;;  %v216_v10 = vld [vmem:[%s897_s25 + $0x90] sm:$0xff] }
  0x16   : > { %213 = vst [vmem:[%s134_s26 + $0x40] sm:$0xff] %v212_v8  ;;  %v218_v11 = vld [vmem:[%s897_s25 + $0x98] sm:$0xff]  ;;  %215 = vst [vmem:[%s134_s26 + $0x48] sm:$0xff] %v214_v9  ;;  %v220_v12 = vld [vmem:[%s897_s25 + $0xc0] sm:$0xff] }
  0x17   : > { %217 = vst [vmem:[%s134_s26 + $0x50] sm:$0xff] %v216_v10  ;;  %219 = vst [vmem:[%s134_s26 + $0x58] sm:$0xff] %v218_v11  ;;  %v222_v13 = vld [vmem:[%s897_s25 + $0xc8] sm:$0xff]  ;;  %v224_v14 = vld [vmem:[%s897_s25 + $0xd0] sm:$0xff] }
  0x18   : > { %221 = vst [vmem:[%s134_s26 + $0x60] sm:$0xff] %v220_v12  ;;  %223 = vst [vmem:[%s134_s26 + $0x68] sm:$0xff] %v222_v13  ;;  %v226_v15 = vld [vmem:[%s897_s25 + $0xd8] sm:$0xff] }
  0x19   : > { %225 = vst [vmem:[%s134_s26 + $0x70] sm:$0xff] %v224_v14  ;;  %227 = vst [vmem:[%s134_s26 + $0x78] sm:$0xff] %v226_v15 }
  0x1a PF: > { %p677_p5 = scmp.ge.s32.totalorder %s840_s14, 1  ;;  %p232_p6 = scmp.lt.s32.totalorder %s840_s14, 3 }
  0x1c   : > { %p233_p7 = pnand %p677_p5, %p232_p6 }
  0x1d   : > { %v784_v16 = vld [vmem:[%s993_s1] sm:$0xff] (!%p233_p7)   ;;  %v842_v17 = vmov (!%p233_p7), 0   ;;  %v785_v18 = vld [vmem:[%s993_s1 + $0x8] sm:$0xff] (!%p233_p7)   ;;  %s239_s4 = sand.u32 (!%p233_p7), 1, %s832_s12   ;;  %v786_v19 = vld [vmem:[%s993_s1 + $0x10] sm:$0xff] (!%p233_p7)   ;;  %vm434_vm0 = vcmask (!%p233_p7), 179200  }
  0x1e   : > { %236 = sbr.rel (%p233_p7) target bundleno = 319 (0x13f), region = 66  ;;  %463 = vmatprep.subr.bf16.mxu0 (!%p233_p7), %v842_v17  ;;  %739 = vmatprep.subr.bf16.mxu1 (!%p233_p7), %v842_v17  ;;  %s678_s5 = sshll.u32 (!%p233_p7), %s239_s4, 7  ;;  %v787_v20 = vld [vmem:[%s993_s1 + $0x18] sm:$0xff] (!%p233_p7)   ;;  %v788_v23 = vld [vmem:[%s993_s1 + $0x20] sm:$0xff] (!%p233_p7)   ;;  %v789_v24 = vld [vmem:[%s993_s1 + $0x28] sm:$0xff] (!%p233_p7)   ;;  %vm459_vm1 = vcmask (!%p233_p7), 1042432  }
  0x1f   : > { %464 = vmatpush1.bf16.msra.mxu0 (!%p233_p7), %v784_v16  ;;  %749 = vmatpush1.bf16.msra.mxu1 (!%p233_p7), %v784_v16  ;;  %s927_s8 = scalar_lea.vmem (!%p233_p7), [#allocation2], %s678_s5  ;;  %v790_v25 = vld [vmem:[%s993_s1 + $0x30] sm:$0xff] (!%p233_p7)   ;;  %v791_v26 = vld [vmem:[%s993_s1 + $0x38] sm:$0xff] (!%p233_p7)   ;;  %v792_v27 = vld [vmem:[%s993_s1 + $0x40] sm:$0xff] (!%p233_p7)   ;;  %s679_s28 = sshll.u32 (!%p233_p7), %s669_s15, 2 }
  0x20   : > { %465 = vmatprep.subr.bf16.mxu0 (!%p233_p7), %v842_v17  ;;  %740 = vmatprep.subr.bf16.mxu1 (!%p233_p7), %v842_v17  ;;  %v796_v21 = vld [vmem:[%s927_s8 + $0x4] ss:$8 sps:$4 sm:$0xff] (!%p233_p7)   ;;  %v793_v28 = vld [vmem:[%s993_s1 + $0x48] ss:$0 sps:$4 sm:$0x77] (!%p233_p7)   ;;  %p264_p8 = scmp.lt.s32.totalorder (!%p233_p7), %s679_s28, 7 }
  0x21   : > { %707 = vmatprep.mubr.msk.bf16.mxu0 (!%p233_p7), %vm434_vm0, %v796_v21  ;;  %v799_v22 = vld [vmem:[%s927_s8 + $0x44] ss:$8 sps:$4 sm:$0xff] (!%p233_p7)   ;;  %v461_v29 = vsel (!%p233_p7), %vm459_vm1, %v793_v28, 0  ;;  %v794_v30 = vld [vmem:[%s927_s8] ss:$8 sps:$4 sm:$0xff] (!%p233_p7)  }
  0x22   : > { %711 = vmatprep.mubr.msk.bf16.mxu1 (!%p233_p7), %vm434_vm0, %v799_v22  ;;  %v797_v31 = vld [vmem:[%s927_s8 + $0x40] ss:$8 sps:$4 sm:$0xff] (!%p233_p7)   ;;  %v800_v32 = vld [vmem:[%s927_s8 + $0x14] ss:$8 sps:$4 sm:$0xff] (!%p233_p7)   ;;  %v804_v34 = vld [vmem:[%s927_s8 + $0x10] ss:$8 sps:$4 sm:$0xff] (!%p233_p7)  }
  0x23   : > { %466 = vmatpush1.bf16.msra.mxu0 (!%p233_p7), %v785_v18  ;;  %750 = vmatpush1.bf16.msra.mxu1 (!%p233_p7), %v785_v18  ;;  %v802_v33 = vld [vmem:[%s927_s8 + $0x54] ss:$8 sps:$4 sm:$0xff] (!%p233_p7)   ;;  %v805_v35 = vld [vmem:[%s927_s8 + $0x50] ss:$8 sps:$4 sm:$0xff] (!%p233_p7)   ;;  %v806_v36 = vld [vmem:[%s927_s8 + $0x24] ss:$8 sps:$4 sm:$0xff] (!%p233_p7)  }
  0x24   : > { %467 = vmatprep.subr.bf16.mxu0 (!%p233_p7), %v842_v17  ;;  %741 = vmatprep.subr.bf16.mxu1 (!%p233_p7), %v842_v17  ;;  %v808_v37 = vld [vmem:[%s927_s8 + $0x64] ss:$8 sps:$4 sm:$0xff] (!%p233_p7)   ;;  %v810_v38 = vld [vmem:[%s927_s8 + $0x20] ss:$8 sps:$4 sm:$0xff] (!%p233_p7)   ;;  %v812_v40 = vld [vmem:[%s927_s8 + $0x34] ss:$8 sps:$4 sm:$0xff] (!%p233_p7)  }
  0x25   : > { %v811_v39 = vld [vmem:[%s927_s8 + $0x60] ss:$8 sps:$4 sm:$0xff]   ;;  %v814_v41 = vld [vmem:[%s927_s8 + $0x74] ss:$8 sps:$4 sm:$0xff]   ;;  %v816_v42 = vld [vmem:[%s927_s8 + $0x30] ss:$8 sps:$4 sm:$0xff]  }
  0x26   : > { %v817_v43 = vld [vmem:[%s927_s8 + $0x70] ss:$8 sps:$4 sm:$0xff]   ;;  %v715_v2 = vld [vmem:[%s994_s2] ss:$0 sm:$0xff]  ;;  %s1000_s28 = smov (!%p264_p8, %s679_s28), 7 }
  0x27   : > { %468 = vmatpush1.bf16.msra.mxu0 %v786_v19  ;;  %751 = vmatpush1.bf16.msra.mxu1 %v786_v19  ;;  %s680_s14 = sshll.u32 %s1000_s28, 2 }
  0x28   : > { %469 = vmatprep.subr.bf16.mxu0 %v842_v17  ;;  %742 = vmatprep.subr.bf16.mxu1 %v842_v17  ;;  %s267_s5 = scalar_lea.vmem %s995_s3, %s680_s14 }
  0x2b   : > { %470 = vmatpush1.bf16.msra.mxu0 %v787_v20  ;;  %752 = vmatpush1.bf16.msra.mxu1 %v787_v20 }
  0x2c   : > { %471 = vmatprep.subr.bf16.mxu0 %v842_v17  ;;  %743 = vmatprep.subr.bf16.mxu1 %v842_v17 }
  0x2f   : > { %472 = vmatpush1.bf16.msra.mxu0 %v788_v23  ;;  %753 = vmatpush1.bf16.msra.mxu1 %v788_v23 }
  0x30   : > { %473 = vmatprep.subr.bf16.mxu0 %v842_v17  ;;  %744 = vmatprep.subr.bf16.mxu1 %v842_v17 }
  0x33   : > { %474 = vmatpush1.bf16.msra.mxu0 %v789_v24  ;;  %754 = vmatpush1.bf16.msra.mxu1 %v789_v24 }
  0x34   : > { %475 = vmatprep.subr.bf16.mxu0 %v842_v17  ;;  %745 = vmatprep.subr.bf16.mxu1 %v842_v17 }
  0x37   : > { %476 = vmatpush1.bf16.msra.mxu0 %v790_v25  ;;  %755 = vmatpush1.bf16.msra.mxu1 %v790_v25 }
  0x38   : > { %477 = vmatprep.subr.bf16.mxu0 %v842_v17  ;;  %746 = vmatprep.subr.bf16.mxu1 %v842_v17 }
  0x3b   : > { %478 = vmatpush1.bf16.msra.mxu0 %v791_v26  ;;  %756 = vmatpush1.bf16.msra.mxu1 %v791_v26 }
  0x3c   : > { %479 = vmatprep.subr.bf16.mxu0 %v842_v17  ;;  %747 = vmatprep.subr.bf16.mxu1 %v842_v17 }
  0x3f   : > { %480 = vmatpush1.bf16.msra.mxu0 %v792_v27  ;;  %757 = vmatpush1.bf16.msra.mxu1 %v792_v27 }
  0x40   : > { %481 = vmatprep.subr.bf16.mxu0 %v842_v17  ;;  %748 = vmatprep.subr.bf16.mxu1 %v842_v17 }
  0x43   : > { %482 = vmatpush1.bf16.msra.mxu0 %v461_v29  ;;  %758 = vmatpush1.bf16.msra.mxu1 %v461_v29 }
  0x46   : > { %496 = vmatmul.mubr.bf16.vlgmr.msra.gmra.mrb[0].mxu0 %v794_v30  ;;  %528 = vmatmul.mubr.bf16.vlgmr.msra.gmra.mrb[0].mxu1 %v797_v31 }
  0x47   : > { %708 = vmatprep.mubr.msk.bf16.mxu0 %vm434_vm0, %v800_v32  ;;  %712 = vmatprep.mubr.msk.bf16.mxu1 %vm434_vm0, %v802_v33 }
  0x4e   : > { %504 = vmatmul.mubr.bf16.gmra.mrb[4].mxu0 %v804_v34  ;;  %536 = vmatmul.mubr.bf16.gmra.mrb[4].mxu1 %v805_v35 }
  0x4f   : > { %709 = vmatprep.mubr.msk.bf16.mxu0 %vm434_vm0, %v806_v36  ;;  %713 = vmatprep.mubr.msk.bf16.mxu1 %vm434_vm0, %v808_v37 }
  0x56   : > { %512 = vmatmul.mubr.bf16.gmra.mrb[8].mxu0 %v810_v38  ;;  %544 = vmatmul.mubr.bf16.gmra.mrb[8].mxu1 %v811_v39 }
  0x57   : > { %710 = vmatprep.mubr.msk.bf16.mxu0 %vm434_vm0, %v812_v40  ;;  %714 = vmatprep.mubr.msk.bf16.mxu1 %vm434_vm0, %v814_v41 }
  0x5e   : > { %520 = vmatmul.mubr.bf16.gmra.mrb[12].mxu0 %v816_v42  ;;  %552 = vmatmul.mubr.bf16.gmra.mrb[12].mxu1 %v817_v43 }
 0x119   : > { %v497_v44 = vpop.f32.mrb[0].mxu0  ;;  %v529_v45 = vpop.f32.mrb[0].mxu1 }
 0x11a   : > { %v499_v46 = vpop.f32.mrb[1].mxu0  ;;  %v531_v47 = vpop.f32.mrb[1].mxu1 }
 0x11b   : > { %v500_v48 = vpop.f32.mrb[2].mxu0  ;;  %v532_v49 = vpop.f32.mrb[2].mxu1 }
 0x11c   : > { %v502_v50 = vpop.f32.mrb[3].mxu0  ;;  %v534_v51 = vpop.f32.mrb[3].mxu1 }
 0x121   : > { %v505_v52 = vpop.f32.mrb[4].mxu0  ;;  %v537_v53 = vpop.f32.mrb[4].mxu1 }
 0x122   : > { %v507_v54 = vpop.f32.mrb[5].mxu0  ;;  %v539_v55 = vpop.f32.mrb[5].mxu1 }
 0x123   : > { %v508_v56 = vpop.f32.mrb[6].mxu0  ;;  %v540_v57 = vpop.f32.mrb[6].mxu1 }
 0x124   : > { %v510_v58 = vpop.f32.mrb[7].mxu0  ;;  %v542_v59 = vpop.f32.mrb[7].mxu1 }
 0x129   : > { %v513_v60 = vpop.f32.mrb[8].mxu0  ;;  %v545_v61 = vpop.f32.mrb[8].mxu1 }
 0x12a   : > { %v560_v62 = vmax.f32 %v497_v44, %v513_v60  ;;  %v564_v63 = vmax.f32 %v529_v45, %v545_v61  ;;  %v515_v0 = vpop.f32.mrb[9].mxu0  ;;  %v547_v1 = vpop.f32.mrb[9].mxu1 }
 0x12b   : > { %v516_v3 = vpop.f32.mrb[10].mxu0  ;;  %v548_v4 = vpop.f32.mrb[10].mxu1 }
 0x12c   : > { %v568_v5 = vmax.f32 %v560_v62, %v564_v63  ;;  %v561_v6 = vmax.f32 %v500_v48, %v516_v3  ;;  %v565_v7 = vmax.f32 %v532_v49, %v548_v4  ;;  %v518_v8 = vpop.f32.mrb[11].mxu0  ;;  %v550_v9 = vpop.f32.mrb[11].mxu1 }
 0x12e   : > { %v579_v10 = vadd.f32 %v715_v2, %v568_v5  ;;  %v569_v11 = vmax.f32 %v561_v6, %v565_v7 }
 0x130   : > { %v580_v12 = vadd.f32 %v715_v2, %v569_v11  ;;  %v583_v15 = vmax.f32 %v579_v10, 0.0 }
 0x131   : > { %v521_v13 = vpop.f32.mrb[12].mxu0  ;;  %v553_v14 = vpop.f32.mrb[12].mxu1 }
 0x132   : > { %v584_v16 = vmax.f32 %v580_v12, 0.0  ;;  %v562_v17 = vmax.f32 %v505_v52, %v521_v13  ;;  %v566_v18 = vmax.f32 %v537_v53, %v553_v14  ;;  %v523_v19 = vpop.f32.mrb[13].mxu0  ;;  %v555_v20 = vpop.f32.mrb[13].mxu1 }
 0x133   : > { %v524_v21 = vpop.f32.mrb[14].mxu0  ;;  %v556_v22 = vpop.f32.mrb[14].mxu1 }
 0x134   : > { %v731_v23 = vpack.c.bf16 %v584_v16, %v583_v15  ;;  %v570_v24 = vmax.f32 %v562_v17, %v566_v18  ;;  %v563_v25 = vmax.f32 %v508_v56, %v524_v21  ;;  %v567_v26 = vmax.f32 %v540_v57, %v556_v22  ;;  %v526_v27 = vpop.f32.mrb[15].mxu0  ;;  %v558_v28 = vpop.f32.mrb[15].mxu1 }
 0x136   : > { %732 = vst [vmem:[%s267_s5] sm:$0xff] %v731_v23   ;;  %v581_v29 = vadd.f32 %v715_v2, %v570_v24  ;;  %v571_v30 = vmax.f32 %v563_v25, %v567_v26 }
 0x138   : > { %v582_v31 = vadd.f32 %v715_v2, %v571_v30  ;;  %v585_v32 = vmax.f32 %v581_v29, 0.0 }
 0x13a   : > { %v586_v33 = vmax.f32 %v582_v31, 0.0 }
 0x13c   : > { %v736_v34 = vpack.c.bf16 %v586_v33, %v585_v32 }
 0x13e   : > { %738 = vst [vmem:[%s267_s5 + $0x8] sm:$0xff] %v736_v34  }
 0x13f PF: > { %p10_p9 = scmp.ge.s32.totalorder %s880_s16, 4   ;;  %s996_s12 = smov %s836_s13 }
 0x140   : > { %s997_s13 = smov %s889_s19  ;;  %s998_s14 = smov %s880_s16 }
 0x141   :  { %12 = sbr.rel (!%p10_p9) target bundleno = 2 (0x2), region = 105 }

// kernel: net_forward.5
= control target key start
LH: loop header
LB: loop body
LE: loop exit
PB: predicated region body
PF: predicated region fallthrough
CT: control target
= control target key end

     0   :  { %v828_v39 = vmov 0.0   ;;  %vm829_vm0 = vmmov 0   ;;  %s1050_s1 = inlined_call_operand.vmem [shape: bf16[512,128], index: 1, kind: input, shape index: {}]   ;;  %s1051_s0 = inlined_call_operand.vmem [shape: bf16[8,512], index: 0, kind: input, shape index: {}]   ;;  %s1052_s3 = inlined_call_operand.vmem [shape: bf16[128,128], index: 3, kind: input, shape index: {}]   ;;  %s1053_s5 = inlined_call_operand.vmem [shape: bf16[128,128], index: 5, kind: input, shape index: {}]   ;;  %s1054_s2 = inlined_call_operand.vmem [shape: f32[1,128], index: 2, kind: input, shape index: {}]   ;;  %s1055_s4 = inlined_call_operand.vmem [shape: f32[1,128], index: 4, kind: input, shape index: {}]   ;;  %s1056_s6 = inlined_call_operand.vmem [shape: f32[1,128], index: 6, kind: input, shape index: {}]   ;;  %s1057_s7 = inlined_call_operand.vmem [shape: f32[8,128], index: 7, kind: output, shape index: {}]  }
   0x1   :  { %v776_v0 = vld [vmem:[%s1050_s1 + $0x40] sm:$0xff]   ;;  %v780_v4 = vld [vmem:[%s1050_s1 + $0x48] sm:$0xff]   ;;  %v784_v8 = vld [vmem:[%s1050_s1 + $0x50] sm:$0xff]  }
   0x2   :  { %v777_v1 = vld [vmem:[%s1050_s1 + $0xc0] sm:$0xff]   ;;  %672 = vmatprep.subr.bf16.mxu0 %v776_v0  ;;  %v781_v5 = vld [vmem:[%s1050_s1 + $0xc8] sm:$0xff]   ;;  %v785_v9 = vld [vmem:[%s1050_s1 + $0xd0] sm:$0xff]  }
   0x3   :  { %v778_v2 = vld [vmem:[%s1050_s1] sm:$0xff]   ;;  %694 = vmatprep.subr.bf16.mxu1 %v777_v1  ;;  %v782_v6 = vld [vmem:[%s1050_s1 + $0x8] sm:$0xff]   ;;  %v786_v10 = vld [vmem:[%s1050_s1 + $0x10] sm:$0xff]  }
   0x4   :  { %v779_v3 = vld [vmem:[%s1050_s1 + $0x80] sm:$0xff]   ;;  %673 = vmatpush3.bf16.msra.mxu0 %v778_v2  ;;  %v783_v7 = vld [vmem:[%s1050_s1 + $0x88] sm:$0xff]   ;;  %v787_v11 = vld [vmem:[%s1050_s1 + $0x90] sm:$0xff]  }
   0x5   :  { %695 = vmatpush3.bf16.msra.mxu1 %v779_v3  ;;  %674 = vmatprep.subr.bf16.mxu0 %v780_v4  ;;  %v788_v12 = vld [vmem:[%s1050_s1 + $0x58] sm:$0xff]   ;;  %v792_v16 = vld [vmem:[%s1050_s1 + $0x60] sm:$0xff]   ;;  %v796_v20 = vld [vmem:[%s1050_s1 + $0x68] sm:$0xff]  }
   0x6   :  { %696 = vmatprep.subr.bf16.mxu1 %v781_v5  ;;  %v789_v13 = vld [vmem:[%s1050_s1 + $0xd8] sm:$0xff]   ;;  %v793_v17 = vld [vmem:[%s1050_s1 + $0xe0] sm:$0xff]   ;;  %v797_v21 = vld [vmem:[%s1050_s1 + $0xe8] sm:$0xff]  }
   0x7   :  { %v790_v14 = vld [vmem:[%s1050_s1 + $0x18] sm:$0xff]   ;;  %v794_v18 = vld [vmem:[%s1050_s1 + $0x20] sm:$0xff]   ;;  %v798_v22 = vld [vmem:[%s1050_s1 + $0x28] sm:$0xff]  }
   0x8   :  { %675 = vmatpush3.bf16.msra.mxu0 %v782_v6  ;;  %v791_v15 = vld [vmem:[%s1050_s1 + $0x98] sm:$0xff]   ;;  %v795_v19 = vld [vmem:[%s1050_s1 + $0xa0] sm:$0xff]   ;;  %v799_v23 = vld [vmem:[%s1050_s1 + $0xa8] sm:$0xff]  }
   0x9   :  { %697 = vmatpush3.bf16.msra.mxu1 %v783_v7  ;;  %676 = vmatprep.subr.bf16.mxu0 %v784_v8  ;;  %v800_v24 = vld [vmem:[%s1050_s1 + $0x70] sm:$0xff]   ;;  %v804_v28 = vld [vmem:[%s1050_s1 + $0x78] sm:$0xff]   ;;  %v27_v32 = vld [vmem:[%s1051_s0] sm:$0xff] }
   0xa   :  { %698 = vmatprep.subr.bf16.mxu1 %v785_v9  ;;  %v801_v25 = vld [vmem:[%s1050_s1 + $0xf0] sm:$0xff]   ;;  %v805_v29 = vld [vmem:[%s1050_s1 + $0xf8] sm:$0xff]   ;;  %v28_v33 = vld [vmem:[%s1051_s0 + $0x8] sm:$0xff]  ;;  %v618_v34 = vcombine.low %v27_v32, %v27_v32  ;;  %v619_v35 = vcombine.high %v27_v32, %v27_v32 }
   0xb   :  { %v802_v26 = vld [vmem:[%s1050_s1 + $0x30] sm:$0xff]   ;;  %v806_v30 = vld [vmem:[%s1050_s1 + $0x38] sm:$0xff]   ;;  %v620_v36 = vcombine.low %v28_v33, %v28_v33  ;;  %v621_v37 = vcombine.high %v28_v33, %v28_v33  ;;  %v812_v38 = vld [vmem:[%s1052_s3] sm:$0xff]  }
   0xc   :  { %677 = vmatpush3.bf16.msra.mxu0 %v786_v10  ;;  %v803_v27 = vld [vmem:[%s1050_s1 + $0xb0] sm:$0xff]   ;;  %v807_v31 = vld [vmem:[%s1050_s1 + $0xb8] sm:$0xff]   ;;  %338 = vmatprep.mubr.bf16.mxu0 %v619_v35  ;;  %v813_v40 = vld [vmem:[%s1052_s3 + $0x8] sm:$0xff]  }
   0xd   :  { %699 = vmatpush3.bf16.msra.mxu1 %v787_v11  ;;  %678 = vmatprep.subr.bf16.mxu0 %v788_v12  ;;  %v814_v41 = vld [vmem:[%s1052_s3 + $0x10] sm:$0xff]   ;;  %v815_v42 = vld [vmem:[%s1052_s3 + $0x18] sm:$0xff]   ;;  %v816_v43 = vld [vmem:[%s1052_s3 + $0x20] sm:$0xff]  }
   0xe   :  { %700 = vmatprep.subr.bf16.mxu1 %v789_v13  ;;  %378 = vmatprep.mubr.bf16.mxu1 %v621_v37  ;;  %v817_v44 = vld [vmem:[%s1052_s3 + $0x28] sm:$0xff]   ;;  %v818_v45 = vld [vmem:[%s1052_s3 + $0x30] sm:$0xff]   ;;  %v819_v46 = vld [vmem:[%s1052_s3 + $0x38] sm:$0xff]  }
   0xf   :  { %v820_v47 = vld [vmem:[%s1053_s5] sm:$0xff]   ;;  %v821_v48 = vld [vmem:[%s1053_s5 + $0x8] sm:$0xff]   ;;  %v822_v49 = vld [vmem:[%s1053_s5 + $0x10] sm:$0xff]  }
  0x10   :  { %679 = vmatpush3.bf16.msra.mxu0 %v790_v14  ;;  %v823_v50 = vld [vmem:[%s1053_s5 + $0x18] sm:$0xff]   ;;  %v824_v51 = vld [vmem:[%s1053_s5 + $0x20] sm:$0xff]   ;;  %v825_v52 = vld [vmem:[%s1053_s5 + $0x28] sm:$0xff]  }
  0x11   :  { %701 = vmatpush3.bf16.msra.mxu1 %v791_v15  ;;  %680 = vmatprep.subr.bf16.mxu0 %v792_v16  ;;  %v617_v55 = vld [vmem:[%s1054_s2] ss:$0 sm:$0xff]  ;;  %v826_v4 = vld [vmem:[%s1053_s5 + $0x30] sm:$0xff]   ;;  %v827_v5 = vld [vmem:[%s1053_s5 + $0x38] sm:$0xff]  }
  0x12   :  { %702 = vmatprep.subr.bf16.mxu1 %v793_v17  ;;  %v654_v6 = vld [vmem:[%s1055_s4] ss:$0 sm:$0xff] }
  0x13   :  { %v663_v14 = vld [vmem:[%s1056_s6] ss:$0 sm:$0xff] }
  0x14   :  { %681 = vmatpush3.bf16.msra.mxu0 %v794_v18 }
  0x15   :  { %703 = vmatpush3.bf16.msra.mxu1 %v795_v19  ;;  %682 = vmatprep.subr.bf16.mxu0 %v796_v20 }
  0x16   :  { %704 = vmatprep.subr.bf16.mxu1 %v797_v21 }
  0x18   :  { %683 = vmatpush3.bf16.msra.mxu0 %v798_v22 }
  0x19   :  { %705 = vmatpush3.bf16.msra.mxu1 %v799_v23  ;;  %684 = vmatprep.subr.bf16.mxu0 %v800_v24 }
  0x1a   :  { %706 = vmatprep.subr.bf16.mxu1 %v801_v25 }
  0x1c   :  { %685 = vmatpush3.bf16.msra.mxu0 %v802_v26 }
  0x1d   :  { %707 = vmatpush3.bf16.msra.mxu1 %v803_v27  ;;  %686 = vmatprep.subr.bf16.mxu0 %v804_v28 }
  0x1e   :  { %708 = vmatprep.subr.bf16.mxu1 %v805_v29 }
  0x20   :  { %687 = vmatpush3.bf16.msra.mxu0 %v806_v30 }
  0x21   :  { %709 = vmatpush3.bf16.msra.mxu1 %v807_v31  ;;  %734 = vmatprep.subr.bf16.mxu0 %v828_v39 }
  0x22   :  { %754 = vmatprep.subr.bf16.mxu1 %v828_v39 }
  0x23   :  { %339 = vmatmul.mubr.bf16.vlgmr.msra.gmra.mrb[0].mxu0 %v618_v34 }
  0x24   :  { %379 = vmatmul.mubr.bf16.vlgmr.msra.gmra.mrb[0].mxu1 %v620_v36  ;;  %735 = vmatpush3.bf16.msra.mxu0 %v812_v38 }
  0x25   :  { %736 = vmatprep.subr.bf16.mxu0 %v828_v39  ;;  %750 = vmatprep.mubr.msk.bf16.mxu0 %vm829_vm0, %v828_v39 }
  0x26   :  { %770 = vmatprep.mubr.msk.bf16.mxu1 %vm829_vm0, %v828_v39  ;;  %755 = vmatpush3.bf16.msra.mxu1 %v820_v47 }
  0x27   :  { %756 = vmatprep.subr.bf16.mxu1 %v828_v39 }
  0x28   :  { %737 = vmatpush3.bf16.msra.mxu0 %v813_v40 }
  0x29   :  { %738 = vmatprep.subr.bf16.mxu0 %v828_v39 }
  0x2a   :  { %757 = vmatpush3.bf16.msra.mxu1 %v821_v48 }
  0x2b   :  { %758 = vmatprep.subr.bf16.mxu1 %v828_v39 }
  0x2c   :  { %739 = vmatpush3.bf16.msra.mxu0 %v814_v41 }
  0x2d   :  { %740 = vmatprep.subr.bf16.mxu0 %v828_v39 }
  0x2e   :  { %759 = vmatpush3.bf16.msra.mxu1 %v822_v49 }
  0x2f   :  { %760 = vmatprep.subr.bf16.mxu1 %v828_v39 }
  0x30   :  { %741 = vmatpush3.bf16.msra.mxu0 %v815_v42 }
  0x31   :  { %742 = vmatprep.subr.bf16.mxu0 %v828_v39 }
  0x32   :  { %761 = vmatpush3.bf16.msra.mxu1 %v823_v50 }
  0x33   :  { %762 = vmatprep.subr.bf16.mxu1 %v828_v39 }
  0x34   :  { %743 = vmatpush3.bf16.msra.mxu0 %v816_v43 }
  0x35   :  { %744 = vmatprep.subr.bf16.mxu0 %v828_v39 }
  0x36   :  { %763 = vmatpush3.bf16.msra.mxu1 %v824_v51 }
  0x37   :  { %764 = vmatprep.subr.bf16.mxu1 %v828_v39 }
  0x38   :  { %745 = vmatpush3.bf16.msra.mxu0 %v817_v44 }
  0x39   :  { %746 = vmatprep.subr.bf16.mxu0 %v828_v39 }
  0x3a   :  { %765 = vmatpush3.bf16.msra.mxu1 %v825_v52 }
  0x3b   :  { %766 = vmatprep.subr.bf16.mxu1 %v828_v39 }
  0x3c   :  { %747 = vmatpush3.bf16.msra.mxu0 %v818_v45 }
  0x3d   :  { %748 = vmatprep.subr.bf16.mxu0 %v828_v39 }
  0x3e   :  { %767 = vmatpush3.bf16.msra.mxu1 %v826_v4 }
  0x3f   :  { %768 = vmatprep.subr.bf16.mxu1 %v828_v39 }
  0x40   :  { %749 = vmatpush3.bf16.msra.mxu0 %v819_v46 }
  0x42   :  { %769 = vmatpush3.bf16.msra.mxu1 %v827_v5 }
  0xf6   :  { %v688_v53 = vpop.f32.mrb[0].mxu0 }
  0xf7   :  { %v710_v54 = vpop.f32.mrb[0].mxu1  ;;  %v689_v56 = vpop.f32.mrb[1].mxu0 }
  0xf8   :  { %v711_v57 = vpop.f32.mrb[1].mxu1  ;;  %v690_v58 = vadd.f32 %v689_v56, %v688_v53  ;;  %v691_v60 = vpop.f32.mrb[2].mxu0 }
  0xf9   :  { %v712_v59 = vadd.f32 %v711_v57, %v710_v54  ;;  %v713_v61 = vpop.f32.mrb[2].mxu1  ;;  %v692_v62 = vpop.f32.mrb[3].mxu0 }
  0xfa   :  { %v714_v63 = vpop.f32.mrb[3].mxu1  ;;  %v341_v0 = vadd.f32 %v690_v58, %v617_v55 }
  0xfc   :  { %v381_v1 = vadd.f32 %v712_v59, %v341_v0 }
  0xfe   :  { %v386_v2 = vmax.f32 %v381_v1, 0.0 }
 0x100   :  { %v387_v3 = vpack.c.bf16 %v386_v2, %v386_v2 }
 0x102   :  { %751 = vmatmul.mubr.bf16.vlgmr.msra.gmra.mrb[4].mxu0 %v387_v3 }
 0x1d5   :  { %v493_v7 = vpop.f32.mrb[4].mxu0 }
 0x1d6   :  { %v494_v8 = vadd.f32 %v654_v6, %v493_v7  ;;  %v752_v9 = vpop.f32.mrb[5].mxu0 }
 0x1d7   :  { %v496_v10 = vpop.f32.mrb[6].mxu0 }
 0x1d8   :  { %v499_v11 = vmax.f32 %v494_v8, 0.0  ;;  %v753_v12 = vpop.f32.mrb[7].mxu0 }
 0x1da   :  { %v500_v13 = vpack.c.bf16 %v499_v11, %v499_v11 }
 0x1dc   :  { %771 = vmatmul.mubr.bf16.vlgmr.msra.gmra.mrb[4].mxu1 %v500_v13 }
 0x2af   :  { %v606_v15 = vpop.f32.mrb[4].mxu1 }
 0x2b0   :  { %v607_v16 = vadd.f32 %v663_v14, %v606_v15  ;;  %v772_v17 = vpop.f32.mrb[5].mxu1 }
 0x2b1   :  { %v609_v18 = vpop.f32.mrb[6].mxu1 }
 0x2b2   :  { %612 = vst [vmem:[%s1057_s7] sm:$0xff] %v607_v16  ;;  %v773_v19 = vpop.f32.mrb[7].mxu1 }

</bundles_post_ra>
